<compile_context>
chip_gen: v7x
topology: tpu7x:2x2x1
jax: 0.10.0
libtpu: 0.0.40
codegen_flags: <defaults>
</compile_context>

<pallas_src>
import functools

import jax
import jax.numpy as jnp
from jax import lax
from jax.experimental import pallas as pl
from jax.experimental.pallas import tpu as pltpu


def _round_up(x, m):
    return ((x + m - 1) // m) * m


# ------------------------------ fused kernel ------------------------------- #
def _conv2x_kernel(xee_ref, xeo_ref, xoe_ref, xoo_ref, rem_ref,
                   w1_ref, w2y_ref, w2r_ref, ml_ref, mr_ref,
                   out_ref, ypad_ref, *, Ho, Wo, F1, F2):
    HW = Ho * Wo
    cout = out_ref.shape[-1]

    ml = ml_ref[...]          # (HW, 1) bf16: 0 where output col j == 0
    mr = mr_ref[...]          # (HW, 1) bf16: 0 where output col j == Wo - 1

    # ---------------- conv1: 3x3 / stride 2 / pad 1, + ReLU ----------------
    # Tap (ki, kj) of the stride-2 conv is a *contiguous* row-block slice of
    # one of the four parity phases of x (spatially flattened, channel minor).
    # The only wrap-around artefact (left border, kj == 0) is masked with ml;
    # top-border rows land in the front zero padding of the phase arrays.
    phase = {('e', 'e'): xee_ref, ('e', 'o'): xeo_ref,
             ('o', 'e'): xoe_ref, ('o', 'o'): xoo_ref}
    acc1 = jnp.zeros((HW, cout), jnp.float32)
    for ki in range(3):
        rph = 'e' if ki == 1 else 'o'
        rshift = -Wo if ki == 0 else 0
        for kj in range(3):
            cph = 'e' if kj == 1 else 'o'
            cshift = -1 if kj == 0 else 0
            s = F1 + rshift + cshift
            tap = phase[(rph, cph)][0, s:s + HW, :]        # (HW, Cin) bf16
            if kj == 0:
                tap = tap * ml
            acc1 = acc1 + jnp.dot(tap, w1_ref[ki * 3 + kj],
                                  preferred_element_type=jnp.float32)

    # y (= relu(conv1)) never leaves VMEM: write it, surrounded by a zero halo
    # that doubles as conv2's spatial zero padding, into the f32 scratch.
    ypad_ref[...] = jnp.zeros(ypad_ref.shape, jnp.float32)
    ypad_ref[F2:F2 + HW, :] = jnp.maximum(acc1, 0.0)

    # --------- conv2: 3x3 / stride 1 / pad 1 over concat([y, rem]) ---------
    # The channel concat is fused away: two matmuls per tap (y branch + rem
    # branch), accumulated in f32.  Each tap is a constant flat shift of the
    # padded flattened buffers; column-wrap rows are masked with ml / mr.
    acc2 = jnp.zeros((HW, cout), jnp.float32)
    for ki in range(3):
        for kj in range(3):
            t = ki * 3 + kj
            s = F2 + (ki - 1) * Wo + (kj - 1)
            ytap = ypad_ref[s:s + HW, :].astype(jnp.bfloat16)  # (HW, Cout)
            rtap = rem_ref[0, s:s + HW, :]                      # (HW, Cout)
            if kj == 0:
                ytap = ytap * ml
                rtap = rtap * ml
            elif kj == 2:
                ytap = ytap * mr
                rtap = rtap * mr
            acc2 = acc2 + jnp.dot(ytap, w2y_ref[t],
                                  preferred_element_type=jnp.float32)
            acc2 = acc2 + jnp.dot(rtap, w2r_ref[t],
                                  preferred_element_type=jnp.float32)

    out_ref[0] = jnp.maximum(acc2, 0.0)


# ------------------------------- JAX wrapper -------------------------------- #
def _phase_flat(x_nhwc, front):
    """Split NHWC into (even/odd row) x (even/odd col) parity phases, flatten
    spatially (channel minor) and zero-pad `front` rows at the start."""
    def f(p):
        n, r, c, ch = p.shape
        return jnp.pad(p.reshape(n, r * c, ch), ((0, 0), (front, 0), (0, 0)))
    return (f(x_nhwc[:, 0::2, 0::2, :]), f(x_nhwc[:, 0::2, 1::2, :]),
            f(x_nhwc[:, 1::2, 0::2, :]), f(x_nhwc[:, 1::2, 1::2, :]))


def _tap_weights(w_oihw):
    """PyTorch (Cout, Cin, kH, kW) -> (kH*kW, Cin, Cout) bf16, tap-major."""
    co, ci, kh, kw = w_oihw.shape
    return (jnp.transpose(w_oihw, (2, 3, 1, 0))
            .reshape(kh * kw, ci, co).astype(jnp.bfloat16))


def conv2x_forward(x, rem, w1, w2):
    """Conv2x(in_ch, out_ch, deconv=False, is_3d=False, concat=True) forward.

    Public API is NCHW (PyTorch convention)."""
    N, Cin, H, W = x.shape
    Cout = w1.shape[0]
    assert H % 2 == 0 and W % 2 == 0, "even spatial dims required"
    Ho, Wo = H // 2, W // 2
    HW = Ho * Wo
    # Mirrors `assert x.size() == rem.size()` in Conv2x.forward (trace time).
    assert rem.shape == (N, Cout, Ho, Wo)

    F1 = _round_up(Wo + 1, 8)   # front zero-pad of the conv1 phase arrays
    F2 = _round_up(Wo + 1, 8)   # front/back zero-pad of the rem / y buffers

    # bf16 BEFORE any spatial restructuring: halves activation HBM bytes.
    x_nhwc = jnp.transpose(x, (0, 2, 3, 1)).astype(jnp.bfloat16)
    rem_nhwc = jnp.transpose(rem, (0, 2, 3, 1)).astype(jnp.bfloat16)

    xee, xeo, xoe, xoo = _phase_flat(x_nhwc, F1)        # each (N, F1+HW, Cin)
    rem_flat = jnp.pad(rem_nhwc.reshape(N, HW, Cout),
                       ((0, 0), (F2, F2), (0, 0)))      # (N, F2+HW+F2, Cout)

    w1_t = _tap_weights(w1)                 # (9, Cin,  Cout)
    w2y_t = _tap_weights(w2[:, :Cout])      # (9, Cout, Cout)  y branch
    w2r_t = _tap_weights(w2[:, Cout:])      # (9, Cout, Cout)  rem branch

    col = jnp.arange(HW, dtype=jnp.int32) % Wo
    m_left = (col != 0).astype(jnp.bfloat16).reshape(HW, 1)
    m_right = (col != Wo - 1).astype(jnp.bfloat16).reshape(HW, 1)

    kernel = functools.partial(_conv2x_kernel, Ho=Ho, Wo=Wo, F1=F1, F2=F2)

    def img_spec(shape):
        return pl.BlockSpec((1,) + tuple(shape[1:]), lambda n: (n, 0, 0))

    def const3(shape):
        return pl.BlockSpec(tuple(shape), lambda n: (0, 0, 0))

    def const2(shape):
        return pl.BlockSpec(tuple(shape), lambda n: (0, 0))

    flops = int(2 * N * HW * 9 * Cout * (Cin + 2 * Cout))
    bytes_accessed = int(
        (4 * xee.size + rem_flat.size + w1_t.size + w2y_t.size + w2r_t.size) * 2
        + N * HW * Cout * 4)

    out_flat = pl.pallas_call(
        kernel,
        out_shape=jax.ShapeDtypeStruct((N, HW, Cout), jnp.float32),
        grid=(N,),
        in_specs=[
            img_spec(xee.shape), img_spec(xeo.shape),
            img_spec(xoe.shape), img_spec(xoo.shape),
            img_spec(rem_flat.shape),
            const3(w1_t.shape), const3(w2y_t.shape), const3(w2r_t.shape),
            const2(m_left.shape), const2(m_right.shape),
        ],
        out_specs=pl.BlockSpec((1, HW, Cout), lambda n: (n, 0, 0)),
        scratch_shapes=[pltpu.VMEM((F2 + HW + F2, Cout), jnp.float32)],
        compiler_params=pltpu.CompilerParams(
            dimension_semantics=("parallel",)),
        cost_estimate=pl.CostEstimate(flops=flops, transcendentals=0,
                                      bytes_accessed=bytes_accessed),
    )(xee, xeo, xoe, xoo, rem_flat, w1_t, w2y_t, w2r_t, m_left, m_right)

    out = out_flat.reshape(N, Ho, Wo, Cout)
    return jnp.transpose(out, (0, 3, 1, 2))             # back to NCHW


# ---------------------------- pure-JAX reference ---------------------------- #
def _ref_forward(x, rem, w1, w2):
    """f32 lax-conv reference with operands rounded to bf16 exactly where the
    Pallas path rounds them."""
    q = lambda t: t.astype(jnp.bfloat16).astype(jnp.float32)
    dn = ("NCHW", "OIHW", "NCHW")
    y = lax.conv_general_dilated(q(x), q(w1), (2, 2), ((1, 1), (1, 1)),
                                 dimension_numbers=dn)
    y = jnp.maximum(y, 0.0)
    z_in = jnp.concatenate([q(y), q(rem)], axis=1)
    z = lax.conv_general_dilated(z_in, q(w2), (1, 1), ((1, 1), (1, 1)),
                                 dimension_numbers=dn)
    return jnp.maximum(z, 0.0)


# ----------------------------------- main ----------------------------------- #
if __name__ == "__main__":
    in_channels, out_channels = 4, 8
    N, H, W = 2, 16, 16

    key = jax.random.PRNGKey(0)
    kx, kr, k1, k2 = jax.random.split(key, 4)

    x = jax.random.normal(kx, (N, in_channels, H, W), jnp.float32)
    rem = jax.random.normal(kr, (N, out_channels, H // 2, W // 2), jnp.float32)

    # Deterministic synthetic weights (shapes from Conv2x.__init__).
    w1 = 0.1 * jax.random.normal(k1, (out_channels, in_channels, 3, 3),
                                 jnp.float32)
    w2 = 0.1 * jax.random.normal(k2, (out_channels, 2 * out_channels, 3, 3),
                                 jnp.float32)

    fwd = jax.jit(conv2x_forward)
    out = jax.block_until_ready(fwd(x, rem, w1, w2))
    ref = jax.block_until_ready(_ref_forward(x, rem, w1, w2))

    assert out.shape == (N, out_channels, H // 2, W // 2)
    err = float(jnp.max(jnp.abs(out - ref)))
    # bf16 operands, f32 accumulation on both paths -> only accumulation-order
    # and one bf16 re-rounding of y differ.
    assert jnp.allclose(out, ref, atol=1e-2, rtol=1e-2), err

    print("KERNEL_OK")
</pallas_src>

<mosaic_0001>
module attributes {stable_mosaic.version = 11 : i64} {
  func.func @_conv2x_kernel(%arg0: i32, %arg1: memref<1x80x4xbf16, #tpu.memory_space<vmem>>, %arg2: memref<1x80x4xbf16, #tpu.memory_space<vmem>>, %arg3: memref<1x80x4xbf16, #tpu.memory_space<vmem>>, %arg4: memref<1x80x4xbf16, #tpu.memory_space<vmem>>, %arg5: memref<1x96x8xbf16, #tpu.memory_space<vmem>>, %arg6: memref<9x4x8xbf16, #tpu.memory_space<vmem>>, %arg7: memref<9x8x8xbf16, #tpu.memory_space<vmem>>, %arg8: memref<9x8x8xbf16, #tpu.memory_space<vmem>>, %arg9: memref<64x1xbf16, #tpu.memory_space<vmem>>, %arg10: memref<64x1xbf16, #tpu.memory_space<vmem>>, %arg11: memref<1x64x8xf32, #tpu.memory_space<vmem>>, %arg12: memref<96x8xf32, #tpu.memory_space<vmem>>) attributes {dimension_semantics = [#tpu.dimension_semantics<parallel>], iteration_bounds = array<i64: 2>, scalar_prefetch = 0 : i64, scratch_operands = 1 : i64, tpu.core_type = #tpu.core_type<tc>, window_params = [{transform_indices = @transform_0, window_bounds = array<i64: 1, 80, 4>}, {transform_indices = @transform_1, window_bounds = array<i64: 1, 80, 4>}, {transform_indices = @transform_2, window_bounds = array<i64: 1, 80, 4>}, {transform_indices = @transform_3, window_bounds = array<i64: 1, 80, 4>}, {transform_indices = @transform_4, window_bounds = array<i64: 1, 96, 8>}, {pipeline_mode = #tpu.pipeline_mode<synchronous>, transform_indices = @transform_5, window_bounds = array<i64: 9, 4, 8>}, {pipeline_mode = #tpu.pipeline_mode<synchronous>, transform_indices = @transform_6, window_bounds = array<i64: 9, 8, 8>}, {pipeline_mode = #tpu.pipeline_mode<synchronous>, transform_indices = @transform_7, window_bounds = array<i64: 9, 8, 8>}, {pipeline_mode = #tpu.pipeline_mode<synchronous>, transform_indices = @transform_8, window_bounds = array<i64: 64, 1>}, {pipeline_mode = #tpu.pipeline_mode<synchronous>, transform_indices = @transform_9, window_bounds = array<i64: 64, 1>}, {transform_indices = @transform_10, window_bounds = array<i64: 1, 64, 8>}]} {
    %c0 = arith.constant 0 : index
    %c0_0 = arith.constant 0 : index
    %0 = vector.load %arg9[%c0, %c0_0] : memref<64x1xbf16, #tpu.memory_space<vmem>>, vector<64x1xbf16>
    %c0_1 = arith.constant 0 : index
    %c0_2 = arith.constant 0 : index
    %1 = vector.load %arg10[%c0_1, %c0_2] : memref<64x1xbf16, #tpu.memory_space<vmem>>, vector<64x1xbf16>
    %cst = arith.constant 0.000000e+00 : f32
    %2 = vector.broadcast %cst : f32 to vector<64x8xf32>
    %c0_3 = arith.constant 0 : index
    %c7 = arith.constant 7 : index
    %c0_4 = arith.constant 0 : index
    %3 = vector.load %arg4[%c0_3, %c7, %c0_4] : memref<1x80x4xbf16, #tpu.memory_space<vmem>>, vector<1x64x4xbf16>
    %4 = vector.shape_cast %3 : vector<1x64x4xbf16> to vector<64x4xbf16>
    %5 = vector.broadcast %0 : vector<64x1xbf16> to vector<64x4xbf16>
    %6 = arith.mulf %4, %5 : vector<64x4xbf16>
    %c0_5 = arith.constant 0 : index
    %c0_6 = arith.constant 0 : index
    %c0_7 = arith.constant 0 : index
    %7 = vector.load %arg6[%c0_5, %c0_6, %c0_7] : memref<9x4x8xbf16, #tpu.memory_space<vmem>>, vector<1x4x8xbf16>
    %8 = vector.shape_cast %7 : vector<1x4x8xbf16> to vector<4x8xbf16>
    %cst_8 = arith.constant dense<0.000000e+00> : vector<64x8xf32>
    %9 = tpu.matmul %6, %8, %cst_8 {dimension_numbers = #tpu.dot_dimension_numbers<[1], [0], [0], [1], [0, 0, 1, 1], [], []>} : vector<64x4xbf16>, vector<4x8xbf16>, vector<64x8xf32> -> vector<64x8xf32>
    %10 = arith.addf %2, %9 : vector<64x8xf32>
    %c0_9 = arith.constant 0 : index
    %c8 = arith.constant 8 : index
    %c0_10 = arith.constant 0 : index
    %11 = vector.load %arg3[%c0_9, %c8, %c0_10] : memref<1x80x4xbf16, #tpu.memory_space<vmem>>, vector<1x64x4xbf16>
    %12 = vector.shape_cast %11 : vector<1x64x4xbf16> to vector<64x4xbf16>
    %c1 = arith.constant 1 : index
    %c0_11 = arith.constant 0 : index
    %c0_12 = arith.constant 0 : index
    %13 = vector.load %arg6[%c1, %c0_11, %c0_12] : memref<9x4x8xbf16, #tpu.memory_space<vmem>>, vector<1x4x8xbf16>
    %14 = vector.shape_cast %13 : vector<1x4x8xbf16> to vector<4x8xbf16>
    %cst_13 = arith.constant dense<0.000000e+00> : vector<64x8xf32>
    %15 = tpu.matmul %12, %14, %cst_13 {dimension_numbers = #tpu.dot_dimension_numbers<[1], [0], [0], [1], [0, 0, 1, 1], [], []>} : vector<64x4xbf16>, vector<4x8xbf16>, vector<64x8xf32> -> vector<64x8xf32>
    %16 = arith.addf %10, %15 : vector<64x8xf32>
    %c0_14 = arith.constant 0 : index
    %c8_15 = arith.constant 8 : index
    %c0_16 = arith.constant 0 : index
    %17 = vector.load %arg4[%c0_14, %c8_15, %c0_16] : memref<1x80x4xbf16, #tpu.memory_space<vmem>>, vector<1x64x4xbf16>
    %18 = vector.shape_cast %17 : vector<1x64x4xbf16> to vector<64x4xbf16>
    %c2 = arith.constant 2 : index
    %c0_17 = arith.constant 0 : index
    %c0_18 = arith.constant 0 : index
    %19 = vector.load %arg6[%c2, %c0_17, %c0_18] : memref<9x4x8xbf16, #tpu.memory_space<vmem>>, vector<1x4x8xbf16>
    %20 = vector.shape_cast %19 : vector<1x4x8xbf16> to vector<4x8xbf16>
    %cst_19 = arith.constant dense<0.000000e+00> : vector<64x8xf32>
    %21 = tpu.matmul %18, %20, %cst_19 {dimension_numbers = #tpu.dot_dimension_numbers<[1], [0], [0], [1], [0, 0, 1, 1], [], []>} : vector<64x4xbf16>, vector<4x8xbf16>, vector<64x8xf32> -> vector<64x8xf32>
    %22 = arith.addf %16, %21 : vector<64x8xf32>
    %c0_20 = arith.constant 0 : index
    %c15 = arith.constant 15 : index
    %c0_21 = arith.constant 0 : index
    %23 = vector.load %arg2[%c0_20, %c15, %c0_21] : memref<1x80x4xbf16, #tpu.memory_space<vmem>>, vector<1x64x4xbf16>
    %24 = vector.shape_cast %23 : vector<1x64x4xbf16> to vector<64x4xbf16>
    %25 = vector.broadcast %0 : vector<64x1xbf16> to vector<64x4xbf16>
    %26 = arith.mulf %24, %25 : vector<64x4xbf16>
    %c3 = arith.constant 3 : index
    %c0_22 = arith.constant 0 : index
    %c0_23 = arith.constant 0 : index
    %27 = vector.load %arg6[%c3, %c0_22, %c0_23] : memref<9x4x8xbf16, #tpu.memory_space<vmem>>, vector<1x4x8xbf16>
    %28 = vector.shape_cast %27 : vector<1x4x8xbf16> to vector<4x8xbf16>
    %cst_24 = arith.constant dense<0.000000e+00> : vector<64x8xf32>
    %29 = tpu.matmul %26, %28, %cst_24 {dimension_numbers = #tpu.dot_dimension_numbers<[1], [0], [0], [1], [0, 0, 1, 1], [], []>} : vector<64x4xbf16>, vector<4x8xbf16>, vector<64x8xf32> -> vector<64x8xf32>
    %30 = arith.addf %22, %29 : vector<64x8xf32>
    %c0_25 = arith.constant 0 : index
    %c16 = arith.constant 16 : index
    %c0_26 = arith.constant 0 : index
    %31 = vector.load %arg1[%c0_25, %c16, %c0_26] : memref<1x80x4xbf16, #tpu.memory_space<vmem>>, vector<1x64x4xbf16>
    %32 = vector.shape_cast %31 : vector<1x64x4xbf16> to vector<64x4xbf16>
    %c4 = arith.constant 4 : index
    %c0_27 = arith.constant 0 : index
    %c0_28 = arith.constant 0 : index
    %33 = vector.load %arg6[%c4, %c0_27, %c0_28] : memref<9x4x8xbf16, #tpu.memory_space<vmem>>, vector<1x4x8xbf16>
    %34 = vector.shape_cast %33 : vector<1x4x8xbf16> to vector<4x8xbf16>
    %cst_29 = arith.constant dense<0.000000e+00> : vector<64x8xf32>
    %35 = tpu.matmul %32, %34, %cst_29 {dimension_numbers = #tpu.dot_dimension_numbers<[1], [0], [0], [1], [0, 0, 1, 1], [], []>} : vector<64x4xbf16>, vector<4x8xbf16>, vector<64x8xf32> -> vector<64x8xf32>
    %36 = arith.addf %30, %35 : vector<64x8xf32>
    %c0_30 = arith.constant 0 : index
    %c16_31 = arith.constant 16 : index
    %c0_32 = arith.constant 0 : index
    %37 = vector.load %arg2[%c0_30, %c16_31, %c0_32] : memref<1x80x4xbf16, #tpu.memory_space<vmem>>, vector<1x64x4xbf16>
    %38 = vector.shape_cast %37 : vector<1x64x4xbf16> to vector<64x4xbf16>
    %c5 = arith.constant 5 : index
    %c0_33 = arith.constant 0 : index
    %c0_34 = arith.constant 0 : index
    %39 = vector.load %arg6[%c5, %c0_33, %c0_34] : memref<9x4x8xbf16, #tpu.memory_space<vmem>>, vector<1x4x8xbf16>
    %40 = vector.shape_cast %39 : vector<1x4x8xbf16> to vector<4x8xbf16>
    %cst_35 = arith.constant dense<0.000000e+00> : vector<64x8xf32>
    %41 = tpu.matmul %38, %40, %cst_35 {dimension_numbers = #tpu.dot_dimension_numbers<[1], [0], [0], [1], [0, 0, 1, 1], [], []>} : vector<64x4xbf16>, vector<4x8xbf16>, vector<64x8xf32> -> vector<64x8xf32>
    %42 = arith.addf %36, %41 : vector<64x8xf32>
    %c0_36 = arith.constant 0 : index
    %c15_37 = arith.constant 15 : index
    %c0_38 = arith.constant 0 : index
    %43 = vector.load %arg4[%c0_36, %c15_37, %c0_38] : memref<1x80x4xbf16, #tpu.memory_space<vmem>>, vector<1x64x4xbf16>
    %44 = vector.shape_cast %43 : vector<1x64x4xbf16> to vector<64x4xbf16>
    %45 = vector.broadcast %0 : vector<64x1xbf16> to vector<64x4xbf16>
    %46 = arith.mulf %44, %45 : vector<64x4xbf16>
    %c6 = arith.constant 6 : index
    %c0_39 = arith.constant 0 : index
    %c0_40 = arith.constant 0 : index
    %47 = vector.load %arg6[%c6, %c0_39, %c0_40] : memref<9x4x8xbf16, #tpu.memory_space<vmem>>, vector<1x4x8xbf16>
    %48 = vector.shape_cast %47 : vector<1x4x8xbf16> to vector<4x8xbf16>
    %cst_41 = arith.constant dense<0.000000e+00> : vector<64x8xf32>
    %49 = tpu.matmul %46, %48, %cst_41 {dimension_numbers = #tpu.dot_dimension_numbers<[1], [0], [0], [1], [0, 0, 1, 1], [], []>} : vector<64x4xbf16>, vector<4x8xbf16>, vector<64x8xf32> -> vector<64x8xf32>
    %50 = arith.addf %42, %49 : vector<64x8xf32>
    %c0_42 = arith.constant 0 : index
    %c16_43 = arith.constant 16 : index
    %c0_44 = arith.constant 0 : index
    %51 = vector.load %arg3[%c0_42, %c16_43, %c0_44] : memref<1x80x4xbf16, #tpu.memory_space<vmem>>, vector<1x64x4xbf16>
    %52 = vector.shape_cast %51 : vector<1x64x4xbf16> to vector<64x4xbf16>
    %c7_45 = arith.constant 7 : index
    %c0_46 = arith.constant 0 : index
    %c0_47 = arith.constant 0 : index
    %53 = vector.load %arg6[%c7_45, %c0_46, %c0_47] : memref<9x4x8xbf16, #tpu.memory_space<vmem>>, vector<1x4x8xbf16>
    %54 = vector.shape_cast %53 : vector<1x4x8xbf16> to vector<4x8xbf16>
    %cst_48 = arith.constant dense<0.000000e+00> : vector<64x8xf32>
    %55 = tpu.matmul %52, %54, %cst_48 {dimension_numbers = #tpu.dot_dimension_numbers<[1], [0], [0], [1], [0, 0, 1, 1], [], []>} : vector<64x4xbf16>, vector<4x8xbf16>, vector<64x8xf32> -> vector<64x8xf32>
    %56 = arith.addf %50, %55 : vector<64x8xf32>
    %c0_49 = arith.constant 0 : index
    %c16_50 = arith.constant 16 : index
    %c0_51 = arith.constant 0 : index
    %57 = vector.load %arg4[%c0_49, %c16_50, %c0_51] : memref<1x80x4xbf16, #tpu.memory_space<vmem>>, vector<1x64x4xbf16>
    %58 = vector.shape_cast %57 : vector<1x64x4xbf16> to vector<64x4xbf16>
    %c8_52 = arith.constant 8 : index
    %c0_53 = arith.constant 0 : index
    %c0_54 = arith.constant 0 : index
    %59 = vector.load %arg6[%c8_52, %c0_53, %c0_54] : memref<9x4x8xbf16, #tpu.memory_space<vmem>>, vector<1x4x8xbf16>
    %60 = vector.shape_cast %59 : vector<1x4x8xbf16> to vector<4x8xbf16>
    %cst_55 = arith.constant dense<0.000000e+00> : vector<64x8xf32>
    %61 = tpu.matmul %58, %60, %cst_55 {dimension_numbers = #tpu.dot_dimension_numbers<[1], [0], [0], [1], [0, 0, 1, 1], [], []>} : vector<64x4xbf16>, vector<4x8xbf16>, vector<64x8xf32> -> vector<64x8xf32>
    %62 = arith.addf %56, %61 : vector<64x8xf32>
    %cst_56 = arith.constant 0.000000e+00 : f32
    %63 = vector.broadcast %cst_56 : f32 to vector<96x8xf32>
    %c0_57 = arith.constant 0 : index
    %c0_58 = arith.constant 0 : index
    %64 = vector.load %arg12[%c0_57, %c0_58] : memref<96x8xf32, #tpu.memory_space<vmem>>, vector<96x8xf32>
    tpu.vector_store %arg12[%c0_57, %c0_58], %63 {strides = array<i32>} : memref<96x8xf32, #tpu.memory_space<vmem>>, vector<96x8xf32>,
    %cst_59 = arith.constant 0.000000e+00 : f32
    %65 = vector.broadcast %cst_59 : f32 to vector<64x8xf32>
    %66 = arith.maximumf %62, %65 : vector<64x8xf32>
    %c16_60 = arith.constant 16 : index
    %c0_61 = arith.constant 0 : index
    %67 = vector.load %arg12[%c16_60, %c0_61] : memref<96x8xf32, #tpu.memory_space<vmem>>, vector<64x8xf32>
    tpu.vector_store %arg12[%c16_60, %c0_61], %66 {strides = array<i32>} : memref<96x8xf32, #tpu.memory_space<vmem>>, vector<64x8xf32>,
    %cst_62 = arith.constant 0.000000e+00 : f32
    %68 = vector.broadcast %cst_62 : f32 to vector<64x8xf32>
    %c7_63 = arith.constant 7 : index
    %c0_64 = arith.constant 0 : index
    %69 = vector.load %arg12[%c7_63, %c0_64] : memref<96x8xf32, #tpu.memory_space<vmem>>, vector<64x8xf32>
    %70 = arith.truncf %69 : vector<64x8xf32> to vector<64x8xbf16>
    %c0_65 = arith.constant 0 : index
    %c7_66 = arith.constant 7 : index
    %c0_67 = arith.constant 0 : index
    %71 = vector.load %arg5[%c0_65, %c7_66, %c0_67] : memref<1x96x8xbf16, #tpu.memory_space<vmem>>, vector<1x64x8xbf16>
    %72 = vector.shape_cast %71 : vector<1x64x8xbf16> to vector<64x8xbf16>
    %73 = vector.broadcast %0 : vector<64x1xbf16> to vector<64x8xbf16>
    %74 = arith.mulf %70, %73 : vector<64x8xbf16>
    %75 = vector.broadcast %0 : vector<64x1xbf16> to vector<64x8xbf16>
    %76 = arith.mulf %72, %75 : vector<64x8xbf16>
    %c0_68 = arith.constant 0 : index
    %c0_69 = arith.constant 0 : index
    %c0_70 = arith.constant 0 : index
    %77 = vector.load %arg7[%c0_68, %c0_69, %c0_70] : memref<9x8x8xbf16, #tpu.memory_space<vmem>>, vector<1x8x8xbf16>
    %78 = vector.shape_cast %77 : vector<1x8x8xbf16> to vector<8x8xbf16>
    %cst_71 = arith.constant dense<0.000000e+00> : vector<64x8xf32>
    %79 = tpu.matmul %74, %78, %cst_71 {dimension_numbers = #tpu.dot_dimension_numbers<[1], [0], [0], [1], [0, 0, 1, 1], [], []>} : vector<64x8xbf16>, vector<8x8xbf16>, vector<64x8xf32> -> vector<64x8xf32>
    %80 = arith.addf %68, %79 : vector<64x8xf32>
    %c0_72 = arith.constant 0 : index
    %c0_73 = arith.constant 0 : index
    %c0_74 = arith.constant 0 : index
    %81 = vector.load %arg8[%c0_72, %c0_73, %c0_74] : memref<9x8x8xbf16, #tpu.memory_space<vmem>>, vector<1x8x8xbf16>
    %82 = vector.shape_cast %81 : vector<1x8x8xbf16> to vector<8x8xbf16>
    %cst_75 = arith.constant dense<0.000000e+00> : vector<64x8xf32>
    %83 = tpu.matmul %76, %82, %cst_75 {dimension_numbers = #tpu.dot_dimension_numbers<[1], [0], [0], [1], [0, 0, 1, 1], [], []>} : vector<64x8xbf16>, vector<8x8xbf16>, vector<64x8xf32> -> vector<64x8xf32>
    %84 = arith.addf %80, %83 : vector<64x8xf32>
    %c8_76 = arith.constant 8 : index
    %c0_77 = arith.constant 0 : index
    %85 = vector.load %arg12[%c8_76, %c0_77] : memref<96x8xf32, #tpu.memory_space<vmem>>, vector<64x8xf32>
    %86 = arith.truncf %85 : vector<64x8xf32> to vector<64x8xbf16>
    %c0_78 = arith.constant 0 : index
    %c8_79 = arith.constant 8 : index
    %c0_80 = arith.constant 0 : index
    %87 = vector.load %arg5[%c0_78, %c8_79, %c0_80] : memref<1x96x8xbf16, #tpu.memory_space<vmem>>, vector<1x64x8xbf16>
    %88 = vector.shape_cast %87 : vector<1x64x8xbf16> to vector<64x8xbf16>
    %c1_81 = arith.constant 1 : index
    %c0_82 = arith.constant 0 : index
    %c0_83 = arith.constant 0 : index
    %89 = vector.load %arg7[%c1_81, %c0_82, %c0_83] : memref<9x8x8xbf16, #tpu.memory_space<vmem>>, vector<1x8x8xbf16>
    %90 = vector.shape_cast %89 : vector<1x8x8xbf16> to vector<8x8xbf16>
    %cst_84 = arith.constant dense<0.000000e+00> : vector<64x8xf32>
    %91 = tpu.matmul %86, %90, %cst_84 {dimension_numbers = #tpu.dot_dimension_numbers<[1], [0], [0], [1], [0, 0, 1, 1], [], []>} : vector<64x8xbf16>, vector<8x8xbf16>, vector<64x8xf32> -> vector<64x8xf32>
    %92 = arith.addf %84, %91 : vector<64x8xf32>
    %c1_85 = arith.constant 1 : index
    %c0_86 = arith.constant 0 : index
    %c0_87 = arith.constant 0 : index
    %93 = vector.load %arg8[%c1_85, %c0_86, %c0_87] : memref<9x8x8xbf16, #tpu.memory_space<vmem>>, vector<1x8x8xbf16>
    %94 = vector.shape_cast %93 : vector<1x8x8xbf16> to vector<8x8xbf16>
    %cst_88 = arith.constant dense<0.000000e+00> : vector<64x8xf32>
    %95 = tpu.matmul %88, %94, %cst_88 {dimension_numbers = #tpu.dot_dimension_numbers<[1], [0], [0], [1], [0, 0, 1, 1], [], []>} : vector<64x8xbf16>, vector<8x8xbf16>, vector<64x8xf32> -> vector<64x8xf32>
    %96 = arith.addf %92, %95 : vector<64x8xf32>
    %c9 = arith.constant 9 : index
    %c0_89 = arith.constant 0 : index
    %97 = vector.load %arg12[%c9, %c0_89] : memref<96x8xf32, #tpu.memory_space<vmem>>, vector<64x8xf32>
    %98 = arith.truncf %97 : vector<64x8xf32> to vector<64x8xbf16>
    %c0_90 = arith.constant 0 : index
    %c9_91 = arith.constant 9 : index
    %c0_92 = arith.constant 0 : index
    %99 = vector.load %arg5[%c0_90, %c9_91, %c0_92] : memref<1x96x8xbf16, #tpu.memory_space<vmem>>, vector<1x64x8xbf16>
    %100 = vector.shape_cast %99 : vector<1x64x8xbf16> to vector<64x8xbf16>
    %101 = vector.broadcast %1 : vector<64x1xbf16> to vector<64x8xbf16>
    %102 = arith.mulf %98, %101 : vector<64x8xbf16>
    %103 = vector.broadcast %1 : vector<64x1xbf16> to vector<64x8xbf16>
    %104 = arith.mulf %100, %103 : vector<64x8xbf16>
    %c2_93 = arith.constant 2 : index
    %c0_94 = arith.constant 0 : index
    %c0_95 = arith.constant 0 : index
    %105 = vector.load %arg7[%c2_93, %c0_94, %c0_95] : memref<9x8x8xbf16, #tpu.memory_space<vmem>>, vector<1x8x8xbf16>
    %106 = vector.shape_cast %105 : vector<1x8x8xbf16> to vector<8x8xbf16>
    %cst_96 = arith.constant dense<0.000000e+00> : vector<64x8xf32>
    %107 = tpu.matmul %102, %106, %cst_96 {dimension_numbers = #tpu.dot_dimension_numbers<[1], [0], [0], [1], [0, 0, 1, 1], [], []>} : vector<64x8xbf16>, vector<8x8xbf16>, vector<64x8xf32> -> vector<64x8xf32>
    %108 = arith.addf %96, %107 : vector<64x8xf32>
    %c2_97 = arith.constant 2 : index
    %c0_98 = arith.constant 0 : index
    %c0_99 = arith.constant 0 : index
    %109 = vector.load %arg8[%c2_97, %c0_98, %c0_99] : memref<9x8x8xbf16, #tpu.memory_space<vmem>>, vector<1x8x8xbf16>
    %110 = vector.shape_cast %109 : vector<1x8x8xbf16> to vector<8x8xbf16>
    %cst_100 = arith.constant dense<0.000000e+00> : vector<64x8xf32>
    %111 = tpu.matmul %104, %110, %cst_100 {dimension_numbers = #tpu.dot_dimension_numbers<[1], [0], [0], [1], [0, 0, 1, 1], [], []>} : vector<64x8xbf16>, vector<8x8xbf16>, vector<64x8xf32> -> vector<64x8xf32>
    %112 = arith.addf %108, %111 : vector<64x8xf32>
    %c15_101 = arith.constant 15 : index
    %c0_102 = arith.constant 0 : index
    %113 = vector.load %arg12[%c15_101, %c0_102] : memref<96x8xf32, #tpu.memory_space<vmem>>, vector<64x8xf32>
    %114 = arith.truncf %113 : vector<64x8xf32> to vector<64x8xbf16>
    %c0_103 = arith.constant 0 : index
    %c15_104 = arith.constant 15 : index
    %c0_105 = arith.constant 0 : index
    %115 = vector.load %arg5[%c0_103, %c15_104, %c0_105] : memref<1x96x8xbf16, #tpu.memory_space<vmem>>, vector<1x64x8xbf16>
    %116 = vector.shape_cast %115 : vector<1x64x8xbf16> to vector<64x8xbf16>
    %117 = vector.broadcast %0 : vector<64x1xbf16> to vector<64x8xbf16>
    %118 = arith.mulf %114, %117 : vector<64x8xbf16>
    %119 = vector.broadcast %0 : vector<64x1xbf16> to vector<64x8xbf16>
    %120 = arith.mulf %116, %119 : vector<64x8xbf16>
    %c3_106 = arith.constant 3 : index
    %c0_107 = arith.constant 0 : index
    %c0_108 = arith.constant 0 : index
    %121 = vector.load %arg7[%c3_106, %c0_107, %c0_108] : memref<9x8x8xbf16, #tpu.memory_space<vmem>>, vector<1x8x8xbf16>
    %122 = vector.shape_cast %121 : vector<1x8x8xbf16> to vector<8x8xbf16>
    %cst_109 = arith.constant dense<0.000000e+00> : vector<64x8xf32>
    %123 = tpu.matmul %118, %122, %cst_109 {dimension_numbers = #tpu.dot_dimension_numbers<[1], [0], [0], [1], [0, 0, 1, 1], [], []>} : vector<64x8xbf16>, vector<8x8xbf16>, vector<64x8xf32> -> vector<64x8xf32>
    %124 = arith.addf %112, %123 : vector<64x8xf32>
    %c3_110 = arith.constant 3 : index
    %c0_111 = arith.constant 0 : index
    %c0_112 = arith.constant 0 : index
    %125 = vector.load %arg8[%c3_110, %c0_111, %c0_112] : memref<9x8x8xbf16, #tpu.memory_space<vmem>>, vector<1x8x8xbf16>
    %126 = vector.shape_cast %125 : vector<1x8x8xbf16> to vector<8x8xbf16>
    %cst_113 = arith.constant dense<0.000000e+00> : vector<64x8xf32>
    %127 = tpu.matmul %120, %126, %cst_113 {dimension_numbers = #tpu.dot_dimension_numbers<[1], [0], [0], [1], [0, 0, 1, 1], [], []>} : vector<64x8xbf16>, vector<8x8xbf16>, vector<64x8xf32> -> vector<64x8xf32>
    %128 = arith.addf %124, %127 : vector<64x8xf32>
    %c16_114 = arith.constant 16 : index
    %c0_115 = arith.constant 0 : index
    %129 = vector.load %arg12[%c16_114, %c0_115] : memref<96x8xf32, #tpu.memory_space<vmem>>, vector<64x8xf32>
    %130 = arith.truncf %129 : vector<64x8xf32> to vector<64x8xbf16>
    %c0_116 = arith.constant 0 : index
    %c16_117 = arith.constant 16 : index
    %c0_118 = arith.constant 0 : index
    %131 = vector.load %arg5[%c0_116, %c16_117, %c0_118] : memref<1x96x8xbf16, #tpu.memory_space<vmem>>, vector<1x64x8xbf16>
    %132 = vector.shape_cast %131 : vector<1x64x8xbf16> to vector<64x8xbf16>
    %c4_119 = arith.constant 4 : index
    %c0_120 = arith.constant 0 : index
    %c0_121 = arith.constant 0 : index
    %133 = vector.load %arg7[%c4_119, %c0_120, %c0_121] : memref<9x8x8xbf16, #tpu.memory_space<vmem>>, vector<1x8x8xbf16>
    %134 = vector.shape_cast %133 : vector<1x8x8xbf16> to vector<8x8xbf16>
    %cst_122 = arith.constant dense<0.000000e+00> : vector<64x8xf32>
    %135 = tpu.matmul %130, %134, %cst_122 {dimension_numbers = #tpu.dot_dimension_numbers<[1], [0], [0], [1], [0, 0, 1, 1], [], []>} : vector<64x8xbf16>, vector<8x8xbf16>, vector<64x8xf32> -> vector<64x8xf32>
    %136 = arith.addf %128, %135 : vector<64x8xf32>
    %c4_123 = arith.constant 4 : index
    %c0_124 = arith.constant 0 : index
    %c0_125 = arith.constant 0 : index
    %137 = vector.load %arg8[%c4_123, %c0_124, %c0_125] : memref<9x8x8xbf16, #tpu.memory_space<vmem>>, vector<1x8x8xbf16>
    %138 = vector.shape_cast %137 : vector<1x8x8xbf16> to vector<8x8xbf16>
    %cst_126 = arith.constant dense<0.000000e+00> : vector<64x8xf32>
    %139 = tpu.matmul %132, %138, %cst_126 {dimension_numbers = #tpu.dot_dimension_numbers<[1], [0], [0], [1], [0, 0, 1, 1], [], []>} : vector<64x8xbf16>, vector<8x8xbf16>, vector<64x8xf32> -> vector<64x8xf32>
    %140 = arith.addf %136, %139 : vector<64x8xf32>
    %c17 = arith.constant 17 : index
    %c0_127 = arith.constant 0 : index
    %141 = vector.load %arg12[%c17, %c0_127] : memref<96x8xf32, #tpu.memory_space<vmem>>, vector<64x8xf32>
    %142 = arith.truncf %141 : vector<64x8xf32> to vector<64x8xbf16>
    %c0_128 = arith.constant 0 : index
    %c17_129 = arith.constant 17 : index
    %c0_130 = arith.constant 0 : index
    %143 = vector.load %arg5[%c0_128, %c17_129, %c0_130] : memref<1x96x8xbf16, #tpu.memory_space<vmem>>, vector<1x64x8xbf16>
    %144 = vector.shape_cast %143 : vector<1x64x8xbf16> to vector<64x8xbf16>
    %145 = vector.broadcast %1 : vector<64x1xbf16> to vector<64x8xbf16>
    %146 = arith.mulf %142, %145 : vector<64x8xbf16>
    %147 = vector.broadcast %1 : vector<64x1xbf16> to vector<64x8xbf16>
    %148 = arith.mulf %144, %147 : vector<64x8xbf16>
    %c5_131 = arith.constant 5 : index
    %c0_132 = arith.constant 0 : index
    %c0_133 = arith.constant 0 : index
    %149 = vector.load %arg7[%c5_131, %c0_132, %c0_133] : memref<9x8x8xbf16, #tpu.memory_space<vmem>>, vector<1x8x8xbf16>
    %150 = vector.shape_cast %149 : vector<1x8x8xbf16> to vector<8x8xbf16>
    %cst_134 = arith.constant dense<0.000000e+00> : vector<64x8xf32>
    %151 = tpu.matmul %146, %150, %cst_134 {dimension_numbers = #tpu.dot_dimension_numbers<[1], [0], [0], [1], [0, 0, 1, 1], [], []>} : vector<64x8xbf16>, vector<8x8xbf16>, vector<64x8xf32> -> vector<64x8xf32>
    %152 = arith.addf %140, %151 : vector<64x8xf32>
    %c5_135 = arith.constant 5 : index
    %c0_136 = arith.constant 0 : index
    %c0_137 = arith.constant 0 : index
    %153 = vector.load %arg8[%c5_135, %c0_136, %c0_137] : memref<9x8x8xbf16, #tpu.memory_space<vmem>>, vector<1x8x8xbf16>
    %154 = vector.shape_cast %153 : vector<1x8x8xbf16> to vector<8x8xbf16>
    %cst_138 = arith.constant dense<0.000000e+00> : vector<64x8xf32>
    %155 = tpu.matmul %148, %154, %cst_138 {dimension_numbers = #tpu.dot_dimension_numbers<[1], [0], [0], [1], [0, 0, 1, 1], [], []>} : vector<64x8xbf16>, vector<8x8xbf16>, vector<64x8xf32> -> vector<64x8xf32>
    %156 = arith.addf %152, %155 : vector<64x8xf32>
    %c23 = arith.constant 23 : index
    %c0_139 = arith.constant 0 : index
    %157 = vector.load %arg12[%c23, %c0_139] : memref<96x8xf32, #tpu.memory_space<vmem>>, vector<64x8xf32>
    %158 = arith.truncf %157 : vector<64x8xf32> to vector<64x8xbf16>
    %c0_140 = arith.constant 0 : index
    %c23_141 = arith.constant 23 : index
    %c0_142 = arith.constant 0 : index
    %159 = vector.load %arg5[%c0_140, %c23_141, %c0_142] : memref<1x96x8xbf16, #tpu.memory_space<vmem>>, vector<1x64x8xbf16>
    %160 = vector.shape_cast %159 : vector<1x64x8xbf16> to vector<64x8xbf16>
    %161 = vector.broadcast %0 : vector<64x1xbf16> to vector<64x8xbf16>
    %162 = arith.mulf %158, %161 : vector<64x8xbf16>
    %163 = vector.broadcast %0 : vector<64x1xbf16> to vector<64x8xbf16>
    %164 = arith.mulf %160, %163 : vector<64x8xbf16>
    %c6_143 = arith.constant 6 : index
    %c0_144 = arith.constant 0 : index
    %c0_145 = arith.constant 0 : index
    %165 = vector.load %arg7[%c6_143, %c0_144, %c0_145] : memref<9x8x8xbf16, #tpu.memory_space<vmem>>, vector<1x8x8xbf16>
    %166 = vector.shape_cast %165 : vector<1x8x8xbf16> to vector<8x8xbf16>
    %cst_146 = arith.constant dense<0.000000e+00> : vector<64x8xf32>
    %167 = tpu.matmul %162, %166, %cst_146 {dimension_numbers = #tpu.dot_dimension_numbers<[1], [0], [0], [1], [0, 0, 1, 1], [], []>} : vector<64x8xbf16>, vector<8x8xbf16>, vector<64x8xf32> -> vector<64x8xf32>
    %168 = arith.addf %156, %167 : vector<64x8xf32>
    %c6_147 = arith.constant 6 : index
    %c0_148 = arith.constant 0 : index
    %c0_149 = arith.constant 0 : index
    %169 = vector.load %arg8[%c6_147, %c0_148, %c0_149] : memref<9x8x8xbf16, #tpu.memory_space<vmem>>, vector<1x8x8xbf16>
    %170 = vector.shape_cast %169 : vector<1x8x8xbf16> to vector<8x8xbf16>
    %cst_150 = arith.constant dense<0.000000e+00> : vector<64x8xf32>
    %171 = tpu.matmul %164, %170, %cst_150 {dimension_numbers = #tpu.dot_dimension_numbers<[1], [0], [0], [1], [0, 0, 1, 1], [], []>} : vector<64x8xbf16>, vector<8x8xbf16>, vector<64x8xf32> -> vector<64x8xf32>
    %172 = arith.addf %168, %171 : vector<64x8xf32>
    %c24 = arith.constant 24 : index
    %c0_151 = arith.constant 0 : index
    %173 = vector.load %arg12[%c24, %c0_151] : memref<96x8xf32, #tpu.memory_space<vmem>>, vector<64x8xf32>
    %174 = arith.truncf %173 : vector<64x8xf32> to vector<64x8xbf16>
    %c0_152 = arith.constant 0 : index
    %c24_153 = arith.constant 24 : index
    %c0_154 = arith.constant 0 : index
    %175 = vector.load %arg5[%c0_152, %c24_153, %c0_154] : memref<1x96x8xbf16, #tpu.memory_space<vmem>>, vector<1x64x8xbf16>
    %176 = vector.shape_cast %175 : vector<1x64x8xbf16> to vector<64x8xbf16>
    %c7_155 = arith.constant 7 : index
    %c0_156 = arith.constant 0 : index
    %c0_157 = arith.constant 0 : index
    %177 = vector.load %arg7[%c7_155, %c0_156, %c0_157] : memref<9x8x8xbf16, #tpu.memory_space<vmem>>, vector<1x8x8xbf16>
    %178 = vector.shape_cast %177 : vector<1x8x8xbf16> to vector<8x8xbf16>
    %cst_158 = arith.constant dense<0.000000e+00> : vector<64x8xf32>
    %179 = tpu.matmul %174, %178, %cst_158 {dimension_numbers = #tpu.dot_dimension_numbers<[1], [0], [0], [1], [0, 0, 1, 1], [], []>} : vector<64x8xbf16>, vector<8x8xbf16>, vector<64x8xf32> -> vector<64x8xf32>
    %180 = arith.addf %172, %179 : vector<64x8xf32>
    %c7_159 = arith.constant 7 : index
    %c0_160 = arith.constant 0 : index
    %c0_161 = arith.constant 0 : index
    %181 = vector.load %arg8[%c7_159, %c0_160, %c0_161] : memref<9x8x8xbf16, #tpu.memory_space<vmem>>, vector<1x8x8xbf16>
    %182 = vector.shape_cast %181 : vector<1x8x8xbf16> to vector<8x8xbf16>
    %cst_162 = arith.constant dense<0.000000e+00> : vector<64x8xf32>
    %183 = tpu.matmul %176, %182, %cst_162 {dimension_numbers = #tpu.dot_dimension_numbers<[1], [0], [0], [1], [0, 0, 1, 1], [], []>} : vector<64x8xbf16>, vector<8x8xbf16>, vector<64x8xf32> -> vector<64x8xf32>
    %184 = arith.addf %180, %183 : vector<64x8xf32>
    %c25 = arith.constant 25 : index
    %c0_163 = arith.constant 0 : index
    %185 = vector.load %arg12[%c25, %c0_163] : memref<96x8xf32, #tpu.memory_space<vmem>>, vector<64x8xf32>
    %186 = arith.truncf %185 : vector<64x8xf32> to vector<64x8xbf16>
    %c0_164 = arith.constant 0 : index
    %c25_165 = arith.constant 25 : index
    %c0_166 = arith.constant 0 : index
    %187 = vector.load %arg5[%c0_164, %c25_165, %c0_166] : memref<1x96x8xbf16, #tpu.memory_space<vmem>>, vector<1x64x8xbf16>
    %188 = vector.shape_cast %187 : vector<1x64x8xbf16> to vector<64x8xbf16>
    %189 = vector.broadcast %1 : vector<64x1xbf16> to vector<64x8xbf16>
    %190 = arith.mulf %186, %189 : vector<64x8xbf16>
    %191 = vector.broadcast %1 : vector<64x1xbf16> to vector<64x8xbf16>
    %192 = arith.mulf %188, %191 : vector<64x8xbf16>
    %c8_167 = arith.constant 8 : index
    %c0_168 = arith.constant 0 : index
    %c0_169 = arith.constant 0 : index
    %193 = vector.load %arg7[%c8_167, %c0_168, %c0_169] : memref<9x8x8xbf16, #tpu.memory_space<vmem>>, vector<1x8x8xbf16>
    %194 = vector.shape_cast %193 : vector<1x8x8xbf16> to vector<8x8xbf16>
    %cst_170 = arith.constant dense<0.000000e+00> : vector<64x8xf32>
    %195 = tpu.matmul %190, %194, %cst_170 {dimension_numbers = #tpu.dot_dimension_numbers<[1], [0], [0], [1], [0, 0, 1, 1], [], []>} : vector<64x8xbf16>, vector<8x8xbf16>, vector<64x8xf32> -> vector<64x8xf32>
    %196 = arith.addf %184, %195 : vector<64x8xf32>
    %c8_171 = arith.constant 8 : index
    %c0_172 = arith.constant 0 : index
    %c0_173 = arith.constant 0 : index
    %197 = vector.load %arg8[%c8_171, %c0_172, %c0_173] : memref<9x8x8xbf16, #tpu.memory_space<vmem>>, vector<1x8x8xbf16>
    %198 = vector.shape_cast %197 : vector<1x8x8xbf16> to vector<8x8xbf16>
    %cst_174 = arith.constant dense<0.000000e+00> : vector<64x8xf32>
    %199 = tpu.matmul %192, %198, %cst_174 {dimension_numbers = #tpu.dot_dimension_numbers<[1], [0], [0], [1], [0, 0, 1, 1], [], []>} : vector<64x8xbf16>, vector<8x8xbf16>, vector<64x8xf32> -> vector<64x8xf32>
    %200 = arith.addf %196, %199 : vector<64x8xf32>
    %cst_175 = arith.constant 0.000000e+00 : f32
    %201 = vector.broadcast %cst_175 : f32 to vector<64x8xf32>
    %202 = arith.maximumf %200, %201 : vector<64x8xf32>
    %c0_176 = arith.constant 0 : index
    %c0_177 = arith.constant 0 : index
    %c0_178 = arith.constant 0 : index
    %203 = vector.load %arg11[%c0_176, %c0_177, %c0_178] : memref<1x64x8xf32, #tpu.memory_space<vmem>>, vector<1x64x8xf32>
    %204 = vector.shape_cast %203 : vector<1x64x8xf32> to vector<64x8xf32>
    %205 = vector.shape_cast %202 : vector<64x8xf32> to vector<1x64x8xf32>
    tpu.vector_store %arg11[%c0_176, %c0_177, %c0_178], %205 {strides = array<i32>} : memref<1x64x8xf32, #tpu.memory_space<vmem>>, vector<1x64x8xf32>,
    return
  }
  func.func @transform_0(%arg0: i32) -> (i32, i32, i32) {
    %c0_i32 = arith.constant 0 : i32
    %c0_i32_0 = arith.constant 0 : i32
    %c0_i32_1 = arith.constant 0 : i32
    return %arg0, %c0_i32, %c0_i32_0 : i32, i32, i32
  }
  func.func @transform_1(%arg0: i32) -> (i32, i32, i32) {
    %c0_i32 = arith.constant 0 : i32
    %c0_i32_0 = arith.constant 0 : i32
    %c0_i32_1 = arith.constant 0 : i32
    return %arg0, %c0_i32, %c0_i32_0 : i32, i32, i32
  }
  func.func @transform_2(%arg0: i32) -> (i32, i32, i32) {
    %c0_i32 = arith.constant 0 : i32
    %c0_i32_0 = arith.constant 0 : i32
    %c0_i32_1 = arith.constant 0 : i32
    return %arg0, %c0_i32, %c0_i32_0 : i32, i32, i32
  }
  func.func @transform_3(%arg0: i32) -> (i32, i32, i32) {
    %c0_i32 = arith.constant 0 : i32
    %c0_i32_0 = arith.constant 0 : i32
    %c0_i32_1 = arith.constant 0 : i32
    return %arg0, %c0_i32, %c0_i32_0 : i32, i32, i32
  }
  func.func @transform_4(%arg0: i32) -> (i32, i32, i32) {
    %c0_i32 = arith.constant 0 : i32
    %c0_i32_0 = arith.constant 0 : i32
    %c0_i32_1 = arith.constant 0 : i32
    return %arg0, %c0_i32, %c0_i32_0 : i32, i32, i32
  }
  func.func @transform_5(%arg0: i32) -> (i32, i32, i32) {
    %c0_i32 = arith.constant 0 : i32
    %c0_i32_0 = arith.constant 0 : i32
    %c0_i32_1 = arith.constant 0 : i32
    %c0_i32_2 = arith.constant 0 : i32
    return %c0_i32, %c0_i32_0, %c0_i32_1 : i32, i32, i32
  }
  func.func @transform_6(%arg0: i32) -> (i32, i32, i32) {
    %c0_i32 = arith.constant 0 : i32
    %c0_i32_0 = arith.constant 0 : i32
    %c0_i32_1 = arith.constant 0 : i32
    %c0_i32_2 = arith.constant 0 : i32
    return %c0_i32, %c0_i32_0, %c0_i32_1 : i32, i32, i32
  }
  func.func @transform_7(%arg0: i32) -> (i32, i32, i32) {
    %c0_i32 = arith.constant 0 : i32
    %c0_i32_0 = arith.constant 0 : i32
    %c0_i32_1 = arith.constant 0 : i32
    %c0_i32_2 = arith.constant 0 : i32
    return %c0_i32, %c0_i32_0, %c0_i32_1 : i32, i32, i32
  }
  func.func @transform_8(%arg0: i32) -> (i32, i32) {
    %c0_i32 = arith.constant 0 : i32
    %c0_i32_0 = arith.constant 0 : i32
    %c0_i32_1 = arith.constant 0 : i32
    return %c0_i32, %c0_i32_0 : i32, i32
  }
  func.func @transform_9(%arg0: i32) -> (i32, i32) {
    %c0_i32 = arith.constant 0 : i32
    %c0_i32_0 = arith.constant 0 : i32
    %c0_i32_1 = arith.constant 0 : i32
    return %c0_i32, %c0_i32_0 : i32, i32
  }
  func.func @transform_10(%arg0: i32) -> (i32, i32, i32) {
    %c0_i32 = arith.constant 0 : i32
    %c0_i32_0 = arith.constant 0 : i32
    %c0_i32_1 = arith.constant 0 : i32
    return %arg0, %c0_i32, %c0_i32_0 : i32, i32, i32
  }
}

</mosaic_0001>

<bundles_post_ra>
// kernel: conv2x_forward.1
= control target key start
LH: loop header
LB: loop body
LE: loop exit
PB: predicated region body
PF: predicated region fallthrough
CT: control target
= control target key end

     0   :  { %s5473_s13 = smov 0   ;;  %s6659_s0 = inlined_call_operand.vmem [shape: bf16[2,80,4], index: 0, kind: input, shape index: {}]   ;;  %s6660_s1 = inlined_call_operand.vmem [shape: bf16[2,80,4], index: 1, kind: input, shape index: {}]   ;;  %s6661_s2 = inlined_call_operand.vmem [shape: bf16[2,80,4], index: 2, kind: input, shape index: {}]   ;;  %s6662_s3 = inlined_call_operand.vmem [shape: bf16[2,80,4], index: 3, kind: input, shape index: {}]   ;;  %s6663_s4 = inlined_call_operand.vmem [shape: bf16[2,96,8], index: 4, kind: input, shape index: {}]   ;;  %s6664_s5 = inlined_call_operand.vmem [shape: bf16[9,4,8], index: 5, kind: input, shape index: {}]   ;;  %s6665_s6 = inlined_call_operand.vmem [shape: bf16[9,8,8], index: 6, kind: input, shape index: {}]   ;;  %s6666_s7 = inlined_call_operand.vmem [shape: bf16[9,8,8], index: 7, kind: input, shape index: {}]   ;;  %s6667_s8 = inlined_call_operand.vmem [shape: bf16[64,1], index: 8, kind: input, shape index: {}]   ;;  %s6668_s9 = inlined_call_operand.vmem [shape: bf16[64,1], index: 9, kind: input, shape index: {}]   ;;  %s6669_s10 = inlined_call_operand.vmem [shape: f32[2,64,8], index: 10, kind: output, shape index: {}]  }
   0x1 LB: > { %s4482_s14 = sadd.s32 4294967295, %s5413_s13   ;;  %p4486_p0 = scmp.ge.s32.totalorder %s5413_s13, 1  ;;  %s5413_s13 = sphi %s5473_s13, %s20_s13  }
   0x2   : > { %p352_p1 = scmp.lt.s32.totalorder %s5413_s13, 3 }
   0x4   : > { %p353_p2 = pnand %p4486_p0, %p352_p1 }
   0x6   : > { %356 = sbr.rel (%p353_p2) target bundleno = 956 (0x3bc), region = 60 }
   0xd   : > { %v443_v0 = vld [vmem:[%s6667_s8 + $0x8] sm:$0xf]  ;;  %v441_v1 = vld [vmem:[%s6667_s8] sm:$0xf]  ;;  %v5415_v2 = vmov 0   ;;  %p410_p3 = scmp.lt.s32.totalorder %s4482_s14, 1  ;;  %v474_v28 = vlaneseq }
   0xe   : > { %5367 = vset.pattern.permute.xlu1 %v5415_v2  ;;  %5366 = vset.pattern.permute.xlu0 %v5415_v2  ;;  %v444_v3 = vld [vmem:[%s6667_s8 + $0xc] sm:$0xf]  ;;  %v442_v4 = vld [vmem:[%s6667_s8 + $0x4] sm:$0xf]  ;;  %v446_v5 = vld [vmem:[%s6667_s8 + $0x14] sm:$0xf] }
   0xf   : > { %492 = vperm.xlu1 %5367, %v443_v0   ;;  %468 = vperm.xlu0 %5366, %v441_v1   ;;  %v445_v6 = vld [vmem:[%s6667_s8 + $0x10] sm:$0xf]  ;;  %s6769_s14 = smov (!%p410_p3, %s4482_s14), 1  ;;  %v448_v7 = vld [vmem:[%s6667_s8 + $0x1c] sm:$0xf]  ;;  %vm706_vm0 = vcmask 1041408  }
  0x10   : > { %v447_v8 = vld [vmem:[%s6667_s8 + $0x18] sm:$0xf]  ;;  %v4494_v9 = vld [vmem:[%s6664_s5 + $0x2] sm:$0x3]  ;;  %s5511_s15 = smul.u32 40, %s6769_s14  ;;  %vm693_vm1 = vcmask 31744  }
  0x11   : > { %v450_v10 = vld [vmem:[%s6668_s9 + $0x4] sm:$0xf]  ;;  %v449_v11 = vld [vmem:[%s6668_s9] sm:$0xf]  ;;  %5325 = vmatprep.subr.msk.bf16.mxu0 %vm706_vm0, %v4494_v9  ;;  %v708_v12 = vsel %vm706_vm0, %v4494_v9, 0  ;;  %v475_v30 = vshrl.u32 %v474_v28, 7 }
  0x12   : > { %4854 = vmatpush3.bf16.msra.mxu0 %v708_v12  ;;  %s5525_s22 = scalar_lea.vmem %s6661_s2, %s5511_s15  ;;  %v452_v13 = vld [vmem:[%s6668_s9 + $0xc] sm:$0xf]  ;;  %v451_v14 = vld [vmem:[%s6668_s9 + $0x8] sm:$0xf]  ;;  %v454_v17 = vld [vmem:[%s6668_s9 + $0x14] sm:$0xf]  ;;  %s5569_s25 = scalar_lea.vmem %s6659_s0, %s5511_s15 }
  0x13   : > { %504 = vperm.xlu1 %5367, %v444_v3   ;;  %480 = vperm.xlu0 %5366, %v442_v4   ;;  %v5368_v15 = vld [vmem:[%s5525_s22 + $0x4] sm:$0xff]   ;;  %v5369_v16 = vld [vmem:[%s5525_s22 + $0xc] sm:$0xff]   ;;  %v5370_v19 = vld [vmem:[%s5525_s22 + $0x14] sm:$0xff]   ;;  %v5416_v26 = vmov 839922192   ;;  %s5600_s28 = scalar_lea.vmem %s6662_s3, %s5511_s15  ;;  %s5686_s16 = scalar_lea.vmem %s6660_s1, %s5511_s15  ;;  %vm2007_vm10 = vcmask 1043456  }
  0x14   : > { %4855 = vmatprep.mubr.msk.bf16.mxu0 %vm693_vm1, %v5368_v15  ;;  %v453_v18 = vld [vmem:[%s6668_s9 + $0x10] sm:$0xf]  ;;  %v5371_v20 = vld [vmem:[%s5525_s22 + $0x1c] sm:$0xff]   ;;  %v455_v22 = vld [vmem:[%s6668_s9 + $0x18] sm:$0xf]  ;;  %v472_v27 = vunpack.c.l.s4 %v5416_v26  ;;  %s5354_s15 = smul.u32 48, %s6769_s14 }
  0x15   : > { %4856 = vmatmul.mubr.msk.bf16.vlgmr.msra.gmra.mrb[0].mxu0 %vm693_vm1, %v5369_v16  ;;  %v456_v21 = vld [vmem:[%s6668_s9 + $0x1c] sm:$0xf]  ;;  %v662_v23 = vld [vmem:[%s6664_s5] sm:$0x3]  ;;  %v5561_v25 = vld [vmem:[%s6664_s5 + $0x4] sm:$0x3] }
  0x16   : > { %4859 = vmatprep.mubr.msk.bf16.mxu0 %vm693_vm1, %v5370_v19  ;;  %5326 = vmatprep.subr.msk.bf16.mxu0 %vm706_vm0, %v662_v23  ;;  %v856_v24 = vsel %vm706_vm0, %v662_v23, 0  ;;  %v473_v29 = vunpack.c.0.s8 %v472_v27  ;;  %vm562_vm2 = vsmask.f32 3328  ;;  %vm563_vm3 = vsmask.f32 7440  ;;  %s5782_s21 = scalar_lea.vmem %s6663_s4, %s5354_s15 }
  0x17   : > { %528 = vperm.xlu1 %5367, %v446_v5   ;;  %516 = vperm.xlu0 %5366, %v445_v6   ;;  %vm5592_vm4 = vmor %vm562_vm2, %vm563_vm3  ;;  %vm798_vm5 = vsmask.f32 4352  ;;  %vm2513_vm6 = vsmask.f32 256  ;;  %vm2514_vm7 = vsmask.f32 4368 }
  0x18   : > { %4864 = vmatpush3.bf16.msra.mxu0 %v856_v24  ;;  %v5571_v33 = vsub.s32 %v473_v29, %v475_v30  ;;  %v457_v29 = vld [vmem:[%s5600_s28] sm:$0x8]  ;;  %vm5895_vm8 = vmor %vm2513_vm6, %vm2514_vm7  ;;  %vm2720_vm9 = vsmask.f32 7424  ;;  %vm1839_vm11 = vcmask 64512  }
  0x19   : > { %5327 = vmatprep.subr.msk.bf16.mxu0 %vm706_vm0, %v5561_v25 }
  0x1b   : > { %552 = vperm.xlu1 %5367, %v448_v7   ;;  %540 = vperm.xlu0 %5366, %v447_v8  }
  0x1d   : > { %4860 = vmatmul.mubr.msk.bf16.gmra.mrb[4].mxu0 %vm693_vm1, %v5371_v20 }
  0x1f   : > { %2403 = vperm.xlu1 %5367, %v450_v10   ;;  %2391 = vperm.xlu0 %5366, %v449_v11  }
  0x23   : > { %2427 = vperm.xlu1 %5367, %v452_v13   ;;  %2415 = vperm.xlu0 %5366, %v451_v14  }
  0x27   : > { %2451 = vperm.xlu1 %5367, %v454_v17   ;;  %2439 = vperm.xlu0 %5366, %v453_v18  }
  0x2b   : > { %2475 = vperm.xlu1 %5367, %v456_v21   ;;  %2463 = vperm.xlu0 %5366, %v455_v22   ;;  %v5607_v22 = vld [vmem:[%s5600_s28 + $0x4] sm:$0xf] }
  0x8e   : > { %v493_v31 = vpop.permute.xlu1 %492  ;;  %v469_v32 = vpop.permute.xlu0 %468 }
  0x8f   : > { %v501_v36 = vrot.slane %v493_v31, %v5571_v33  ;;  %v477_v39 = vrot.slane %v469_v32, %v5571_v33 }
  0x91   : > { %v566_v45 = vshll.u32 %v477_v39, 16  ;;  %v569_v46 = vshrl.u32 %v477_v39, 16  ;;  %v585_v49 = vshll.u32 %v501_v36, 16  ;;  %v589_v50 = vshrl.u32 %v501_v36, 16 }
  0x92   : > { %v505_v34 = vpop.permute.xlu1 %504  ;;  %v481_v35 = vpop.permute.xlu0 %480 }
  0x93   : > { %v513_v37 = vrot.slane %v505_v34, %v5571_v33  ;;  %v489_v38 = vrot.slane %v481_v35, %v5571_v33  ;;  %v5585_v55 = vrot.slane %v566_v45, 5  ;;  %v571_v56 = vrot.slane %v569_v46, 4  ;;  %v5619_v34 = vld [vmem:[%s5600_s28 + $0x8] sm:$0xf]  ;;  %v5622_v35 = vld [vmem:[%s5600_s28 + $0xc] sm:$0xf] }
  0x94   : > { %v587_v59 = vrot.slane %v585_v49, 5  ;;  %v591_v60 = vrot.slane %v589_v50, 4 }
  0x95   : > { %v5577_v40 = vcombine.low %v501_v36, %v513_v37  ;;  %v5579_v43 = vcombine.low %v477_v39, %v489_v38  ;;  %v575_v52 = vshll.u32 %v489_v38, 16  ;;  %v579_v53 = vshrl.u32 %v489_v38, 16 }
  0x96   : > { %v529_v41 = vpop.permute.xlu1 %528  ;;  %v517_v42 = vpop.permute.xlu0 %516  ;;  %v572_v63 = vor.u32 %v571_v56, %v5585_v55  ;;  %v592_v1 = vor.u32 %v591_v60, %v587_v59  ;;  %v595_v2 = vshll.u32 %v513_v37, 16  ;;  %v599_v3 = vshrl.u32 %v513_v37, 16 }
  0x97   : > { %6696 = vst [vmem:[#allocation3_spill] sm:$0xff] %v5577_v40  ;;  %6697 = vst [vmem:[#allocation4_spill] sm:$0xff] %v5579_v43  ;;  %v537_v44 = vrot.slane %v529_v41, %v5571_v33  ;;  %v525_v47 = vrot.slane %v517_v42, %v5571_v33  ;;  %v577_v61 = vrot.slane %v575_v52, 5  ;;  %v581_v62 = vrot.slane %v579_v53, 4 }
  0x98   : > { %v573_v7 = vrot.slane %v572_v63, 4  ;;  %v593_v11 = vrot.slane %v592_v1, 4  ;;  %v597_v12 = vrot.slane %v595_v2, 5  ;;  %v601_v15 = vrot.slane %v599_v3, 4 }
  0x99   : > { %v5583_v54 = vcombine.low %v525_v47, %v537_v44  ;;  %v582_v4 = vor.u32 %v581_v62, %v577_v61  ;;  %v605_v5 = vshll.u32 %v525_v47, 16  ;;  %v609_v6 = vshrl.u32 %v525_v47, 16  ;;  %v5643_v62 = vld [vmem:[%s5600_s28 + $0x14] sm:$0xf] }
  0x9a   : > { %v553_v48 = vpop.permute.xlu1 %552  ;;  %v541_v51 = vpop.permute.xlu0 %540  ;;  %v615_v13 = vshll.u32 %v537_v44, 16  ;;  %v619_v14 = vshrl.u32 %v537_v44, 16  ;;  %v5604_v19 = vsel %vm5592_vm4, %v573_v7, %v577_v61  ;;  %v5611_v26 = vsel %vm5592_vm4, %v593_v11, %v597_v12  ;;  %v5640_v61 = vld [vmem:[%s5600_s28 + $0x10] sm:$0xf]  ;;  %v5655_v7 = vld [vmem:[%s5600_s28 + $0x20] sm:$0xf] }
  0x9b   : > { %6698 = vst [vmem:[#allocation5_spill] sm:$0xff] %v5583_v54  ;;  %v561_v57 = vrot.slane %v553_v48, %v5571_v33  ;;  %v549_v58 = vrot.slane %v541_v51, %v5571_v33  ;;  %v583_v16 = vrot.slane %v582_v4, 4  ;;  %v607_v17 = vrot.slane %v605_v5, 5 }
  0x9c   : > { %v611_v18 = vrot.slane %v609_v6, 4  ;;  %v617_v27 = vrot.slane %v615_v13, 5  ;;  %v621_v28 = vrot.slane %v619_v14, 4  ;;  %v602_v30 = vor.u32 %v601_v15, %v597_v12  ;;  %v5652_v6 = vld [vmem:[%s5600_s28 + $0x1c] sm:$0xf] }
  0x9d   : > { %v5590_v0 = vcombine.low %v549_v58, %v561_v57  ;;  %v625_v9 = vshll.u32 %v549_v58, 16  ;;  %v629_v10 = vshrl.u32 %v549_v58, 16  ;;  %v635_v20 = vshll.u32 %v561_v57, 16  ;;  %v5666_v12 = vld [vmem:[%s5600_s28 + $0x18] sm:$0xf] }
  0x9e   : > { %v639_v21 = vshrl.u32 %v561_v57, 16  ;;  %v5616_v31 = vsel %vm5592_vm4, %v583_v16, %v587_v59  ;;  %v612_v32 = vor.u32 %v611_v18, %v607_v17  ;;  %v654_v36 = vmul.bf16 %v5604_v19, %v5607_v22 }
  0x9f   : > { %6699 = vst [vmem:[#allocation6_spill] sm:$0xff] %v5590_v0  ;;  %v627_v23 = vrot.slane %v625_v9, 5  ;;  %v631_v24 = vrot.slane %v629_v10, 4  ;;  %v637_v37 = vrot.slane %v635_v20, 5  ;;  %v653_v41 = vmul.bf16 %v5585_v55, %v457_v29 }
  0xa0   : > { %v641_v38 = vrot.slane %v639_v21, 4  ;;  %v622_v42 = vor.u32 %v621_v28, %v617_v27  ;;  %v655_v44 = vmul.bf16 %v5616_v31, %v5619_v34  ;;  %v656_v45 = vmul.bf16 %v5611_v26, %v5622_v35 }
  0xa1   : > { %v632_v39 = vor.u32 %v631_v24, %v627_v23  ;;  %v603_v46 = vrot.slane %v602_v30, 4  ;;  %v613_v47 = vrot.slane %v612_v32, 4  ;;  %v4503_v48 = vcombine.low %v653_v41, %v654_v36 }
  0xa2   : > { %v642_v49 = vor.u32 %v641_v38, %v637_v37  ;;  %v4504_v50 = vcombine.low %v655_v44, %v656_v45  ;;  %v623_v56 = vrot.slane %v622_v42, 4  ;;  %v958_v38 = vsel %vm706_vm0, %v5561_v25, 0 }
  0xa3   : > { %v633_v51 = vrot.slane %v632_v39, 4  ;;  %v800_v52 = vshrl.u32 %v4503_v48, 16  ;;  %v803_v53 = vshll.u32 %v4503_v48, 16  ;;  %v5633_v59 = vsel %vm5592_vm4, %v603_v46, %v607_v17  ;;  %v4521_v46 = vld [vmem:[%s6664_s5 + $0x6] sm:$0x3] }
  0xa4   : > { %v808_v57 = vshrl.u32 %v4504_v50, 16  ;;  %v811_v58 = vshll.u32 %v4504_v50, 16  ;;  %v5637_v60 = vsel %vm5592_vm4, %v613_v47, %v617_v27  ;;  %v5645_v63 = vrot.slane %v642_v49, 4  ;;  %v5690_v47 = vld [vmem:[%s5686_s16 + $0xc] sm:$0xf] }
  0xa5   : > { %v802_v1 = vrot.slane %v800_v52, 3  ;;  %v805_v2 = vrot.slane %v803_v53, 4  ;;  %v5649_v3 = vsel %vm5592_vm4, %v633_v51, %v637_v37  ;;  %v5659_v9 = vsel %vm5592_vm4, %v623_v56, %v627_v23  ;;  %v5693_v48 = vld [vmem:[%s5600_s28 + $0xc] sm:$0xf]  ;;  %v5698_v50 = vld [vmem:[%s5686_s16 + $0x10] sm:$0xf] }
  0xa6   : > { %6702 = vst [vmem:[#allocation7_spill] sm:$0xff] %v5645_v63  ;;  %v810_v4 = vrot.slane %v808_v57, 3  ;;  %v813_v5 = vrot.slane %v811_v58, 4  ;;  %v657_v10 = vmul.bf16 %v5633_v59, %v5640_v61  ;;  %v658_v11 = vmul.bf16 %v5637_v60, %v5643_v62  ;;  %v5701_v51 = vld [vmem:[%s5600_s28 + $0x14] sm:$0xf] }
  0xa7   : > { %v806_v13 = vor.u32 %v805_v2, %v802_v1  ;;  %v660_v16 = vmul.bf16 %v5649_v3, %v5652_v6  ;;  %v661_v8 = vmul.bf16 %v5645_v63, %v5655_v7  ;;  %v659_v18 = vmul.bf16 %v5659_v9, %v5666_v12  ;;  %v5705_v53 = vld [vmem:[%s5686_s16 + $0x8] sm:$0xf]  ;;  %v5710_v57 = vld [vmem:[%s5600_s28 + $0x10] sm:$0xf]  ;;  %v1033_v2 = vld [vmem:[%s5686_s16 + $0x4] sm:$0x8] }
  0xa8   : > { %v814_v14 = vor.u32 %v813_v5, %v810_v4  ;;  %v4505_v15 = vcombine.low %v657_v10, %v658_v11  ;;  %v1044_v56 = vmul.bf16 %v5690_v47, %v5616_v31  ;;  %v1447_v58 = vmul.bf16 %v5693_v48, %v5616_v31 }
  0xa9   : > { %v4506_v23 = vcombine.low %v659_v18, %v660_v16  ;;  %v4507_v24 = vcombine.low %v661_v8, %v661_v8  ;;  %v4513_v1 = vcombine.low %v5607_v22, %v5619_v34  ;;  %v1045_v4 = vmul.bf16 %v5698_v50, %v5611_v26  ;;  %v5730_v22 = vld [vmem:[%s5686_s16 + $0x14] sm:$0xf]  ;;  %v5735_v16 = vld [vmem:[%s5686_s16 + $0x18] sm:$0xf]  ;;  %v5738_v8 = vld [vmem:[%s5686_s16 + $0x20] sm:$0xf] }
  0xaa   : > { %v815_v17 = vsel %vm798_vm5, %v806_v13, %v814_v14  ;;  %v817_v20 = vshrl.u32 %v4505_v15, 16  ;;  %v820_v21 = vshll.u32 %v4505_v15, 16  ;;  %v1449_v5 = vmul.bf16 %v5701_v51, %v5633_v59  ;;  %v5726_v13 = vld [vmem:[%s5600_s28 + $0x18] sm:$0xf] }
  0xab   : > { %4865 = vmatprep.mubr.msk.bf16.mxu0 %vm693_vm1, %v815_v17  ;;  %v826_v29 = vshrl.u32 %v4506_v23, 16  ;;  %v829_v30 = vshll.u32 %v4506_v23, 16  ;;  %v835_v32 = vshrl.u32 %v4507_v24, 16  ;;  %v838_v36 = vshll.u32 %v4507_v24, 16  ;;  %v5747_v23 = vld [vmem:[%s5600_s28 + $0x1c] sm:$0xf] }
  0xac   : > { %v819_v27 = vrot.slane %v817_v20, 3  ;;  %v822_v28 = vrot.slane %v820_v21, 4  ;;  %v1043_v10 = vmul.bf16 %v5705_v53, %v5604_v19  ;;  %v1448_v11 = vmul.bf16 %v5710_v57, %v5611_v26  ;;  %v5750_v24 = vld [vmem:[%s5600_s28 + $0x20] sm:$0xf] }
  0xad   : > { %v828_v39 = vrot.slane %v826_v29, 3  ;;  %v831_v41 = vrot.slane %v829_v30, 4  ;;  %v837_v44 = vrot.slane %v835_v32, 3  ;;  %v840_v45 = vrot.slane %v838_v36, 4 }
  0xae   : > { %v823_v37 = vor.u32 %v822_v28, %v819_v27  ;;  %v4523_v34 = vcombine.low %v1044_v56, %v1045_v4  ;;  %v1042_v15 = vmul.bf16 %v1033_v2, %v5585_v55  ;;  %v4551_v17 = vcombine.low %v1447_v58, %v1448_v11  ;;  %v5752_v27 = vpop.permute.xlu1 %2403  ;;  %v5754_v28 = vpop.permute.xlu0 %2391  ;;  %v5777_v2 = vld [vmem:[%s6664_s5 + $0x8] sm:$0x3] }
  0xaf   : > { %v832_v25 = vor.u32 %v831_v41, %v828_v39  ;;  %v841_v52 = vor.u32 %v840_v45, %v837_v44  ;;  %v4514_v18 = vcombine.low %v5622_v35, %v5640_v61  ;;  %v1133_v20 = vsel %vm706_vm0, %v4521_v46, 0 }
  0xb0   : > { %v824_v42 = vsel %vm798_vm5, %v814_v14, %v823_v37  ;;  %v1450_v21 = vmul.bf16 %v5726_v13, %v5637_v60  ;;  %v4515_v29 = vcombine.low %v5643_v62, %v5666_v12  ;;  %v1046_v35 = vmul.bf16 %v5730_v22, %v5633_v59 }
  0xb1   : > { %4866 = vmatmul.mubr.msk.bf16.vlgmr.msra.gmra.mrb[0].mxu0 %vm693_vm1, %v824_v42  ;;  %v833_v49 = vsel %vm798_vm5, %v823_v37, %v832_v25  ;;  %v842_v14 = vsel %vm798_vm5, %v832_v25, %v841_v52  ;;  %v4522_v61 = vcombine.low %v1042_v15, %v1043_v10  ;;  %v1488_v30 = vshrl.u32 %v4551_v17, 16  ;;  %v5763_v37 = vld [vmem:[%s5686_s16 + $0x1c] sm:$0xf] }
  0xb2   : > { %4874 = vmatpush3.bf16.msra.mxu0 %v958_v38  ;;  %4869 = vmatprep.mubr.msk.bf16.mxu0 %vm693_vm1, %v833_v49  ;;  %v1085_v32 = vshrl.u32 %v4523_v34, 16  ;;  %v1047_v36 = vmul.bf16 %v5735_v16, %v5637_v60  ;;  %v1491_v38 = vshll.u32 %v4551_v17, 16  ;;  %v4552_v39 = vcombine.low %v1449_v5, %v1450_v21  ;;  %v2428_v11 = vpop.permute.xlu1 %2427  ;;  %v5786_v17 = vld [vmem:[%s5686_s16 + $0x24] sm:$0xf] }
  0xb3   : > { %5328 = vmatprep.subr.msk.bf16.mxu0 %vm706_vm0, %v4521_v46  ;;  %v1088_v41 = vshll.u32 %v4523_v34, 16  ;;  %v1049_v42 = vmul.bf16 %v5738_v8, %v5649_v3  ;;  %v1451_v62 = vmul.bf16 %v5747_v23, %v5659_v9  ;;  %v1452_v12 = vmul.bf16 %v5750_v24, %v5649_v3 }
  0xb4   : > { %v1490_v44 = vrot.slane %v1488_v30, 3  ;;  %v1493_v45 = vrot.slane %v1491_v38, 4  ;;  %v1497_v46 = vshrl.u32 %v4552_v39, 16  ;;  %v1500_v25 = vshll.u32 %v4552_v39, 16 }
  0xb5   : > { %v1077_v49 = vshrl.u32 %v4522_v61, 16  ;;  %v1080_v52 = vshll.u32 %v4522_v61, 16  ;;  %v1048_v56 = vmul.bf16 %v5763_v37, %v5659_v9  ;;  %v4553_v58 = vcombine.low %v1451_v62, %v1452_v12 }
  0xb6   : > { %v4524_v4 = vcombine.low %v1046_v35, %v1047_v36  ;;  %v1499_v5 = vrot.slane %v1497_v46, 3  ;;  %v1502_v10 = vrot.slane %v1500_v25, 4  ;;  %v1090_v34 = vrot.slane %v1088_v41, 4  ;;  %v5794_v36 = vld [vmem:[%s5782_s21 + $0x10] sm:$0xf] }
  0xb7   : > { %v4525_v15 = vcombine.low %v1048_v56, %v1049_v42  ;;  %v1506_v21 = vshrl.u32 %v4553_v58, 16  ;;  %v1509_v61 = vshll.u32 %v4553_v58, 16  ;;  %v4516_v35 = vcombine.low %v5652_v6, %v5655_v7  ;;  %6703 = vst [vmem:[#allocation8_spill] sm:$0xff] %v5794_v36  ;;  %v1885_v42 = vld [vmem:[%s5782_s21 + $0x14] sm:$0xf]  ;;  %v2452_v56 = vpop.permute.xlu1 %2451 }
  0xb8   : > { %v5791_v30 = vor.u32 %v1493_v45, %v1490_v44  ;;  %v1082_v38 = vrot.slane %v1080_v52, 4  ;;  %v1097_v62 = vshll.u32 %v4524_v4, 16  ;;  %v5808_v46 = vld [vmem:[%s5782_s21 + $0xc] sm:$0xf]  ;;  %v1921_v25 = vmul.bf16 %v5794_v36, %v5633_v59 }
  0xb9   : > { %4870 = vmatmul.mubr.msk.bf16.gmra.mrb[4].mxu0 %vm693_vm1, %v842_v14  ;;  %v2416_v14 = vpop.permute.xlu0 %2415  ;;  %v1508_v39 = vrot.slane %v1506_v21, 3  ;;  %v1511_v41 = vrot.slane %v1509_v61, 4  ;;  %v1103_v12 = vshrl.u32 %v4525_v15, 16  ;;  %v1106_v44 = vshll.u32 %v4525_v15, 16 }
  0xba   : > { %4875 = vmatprep.mubr.msk.bf16.mxu0 %vm693_vm1, %v4513_v1  ;;  %v1087_v1 = vrot.slane %v1085_v32, 3  ;;  %v1503_v32 = vor.u32 %v1502_v10, %v1499_v5  ;;  %v1922_v52 = vmul.bf16 %v1885_v42, %v5637_v60  ;;  %v1099_v10 = vrot.slane %v1097_v62, 4 }
  0xbb   : > { %v5805_v45 = vor.u32 %v1511_v41, %v1508_v39  ;;  %v5823_v21 = vrot.slane %v5752_v27, %v5571_v33  ;;  %v1105_v39 = vrot.slane %v1103_v12, 3  ;;  %v1108_v41 = vrot.slane %v1106_v44, 4 }
  0xbc   : > { %v5803_v6 = vsel %vm798_vm5, %v5791_v30, %v1503_v32  ;;  %v1091_v7 = vor.u32 %v1090_v34, %v1087_v1  ;;  %v5819_v15 = vcombine.low %v1921_v25, %v1922_v52  ;;  %v5839_v27 = vrot.slane %v2428_v11, %v5571_v33 }
  0xbd   : > { %v2440_v58 = vpop.permute.xlu0 %2439  ;;  %v5817_v1 = vsel %vm798_vm5, %v1503_v32, %v5805_v45  ;;  %6704 = vst [vmem:[#allocation9_spill] sm:$0xff] %v5823_v21  ;;  %v5832_v32 = vrot.slane %v2452_v56, %v5571_v33  ;;  %v1251_v56 = vsel %vm706_vm0, %v5777_v2, 0 }
  0xbe   : > { %6708 = vst [vmem:[#allocation13_spill] sm:$0xff] %v5839_v27  ;;  %v2543_v11 = vshrl.u32 %v5839_v27, 16  ;;  %v2546_v54 = vshll.u32 %v5839_v27, 16 }
  0xbf   : > { %6706 = vst [vmem:[#allocation11_spill] sm:$0xff] %v5832_v32  ;;  %v2561_v44 = vshrl.u32 %v5832_v32, 16 }
  0xc1   : > { %4876 = vmatmul.mubr.msk.bf16.vlgmr.msra.gmra.mrb[0].mxu0 %vm693_vm1, %v4514_v18  ;;  %v1079_v18 = vrot.slane %v1077_v49, 3  ;;  %v2464_v52 = vpop.permute.xlu0 %2463 }
  0xc2   : > { %4884 = vmatpush3.bf16.msra.mxu0 %v1133_v20  ;;  %4879 = vmatprep.mubr.msk.bf16.mxu0 %vm693_vm1, %v4515_v29  ;;  %v1094_v20 = vshrl.u32 %v4524_v4, 16  ;;  %v1050_v29 = vmul.bf16 %v5786_v17, %v5645_v63  ;;  %v5861_v49 = vrot.slane %v2464_v52, %v5571_v33 }
  0xc3   : > { %5329 = vmatprep.subr.msk.bf16.mxu0 %vm706_vm0, %v5777_v2  ;;  %v1083_v4 = vor.u32 %v1082_v38, %v1079_v18  ;;  %v5829_v18 = vrot.slane %v5754_v28, %v5571_v33  ;;  %v5835_v38 = vrot.slane %v2440_v58, %v5571_v33  ;;  %v2525_v28 = vshrl.u32 %v5823_v21, 16  ;;  %v2476_v58 = vpop.permute.xlu1 %2475 }
  0xc4   : > { %v1096_v5 = vrot.slane %v1094_v20, 3  ;;  %v4526_v34 = vcombine.low %v1050_v29, %v1050_v29  ;;  %v1109_v29 = vor.u32 %v1108_v41, %v1105_v39  ;;  %v2528_v39 = vshll.u32 %v5823_v21, 16  ;;  %v5858_v41 = vld [vmem:[%s5782_s21 + $0x18] sm:$0xf]  ;;  %6711 = vst [vmem:[#allocation16_spill] sm:$0xff] %v5861_v49 }
  0xc5   : > { %v1092_v61 = vsel %vm798_vm5, %v1083_v4, %v1091_v7  ;;  %6705 = vst [vmem:[#allocation10_spill] sm:$0xff] %v5829_v18  ;;  %6707 = vst [vmem:[#allocation12_spill] sm:$0xff] %v5835_v38  ;;  %v2517_v12 = vshrl.u32 %v5829_v18, 16  ;;  %v2552_v25 = vshrl.u32 %v5835_v38, 16 }
  0xc6   : > { %v1100_v42 = vor.u32 %v1099_v10, %v1096_v5  ;;  %v1112_v20 = vshrl.u32 %v4526_v34, 16  ;;  %v1115_v62 = vshll.u32 %v4526_v34, 16  ;;  %v4540_v34 = vld [vmem:[%s6664_s5 + $0xa] sm:$0x3]  ;;  %6710 = vst [vmem:[#allocation15_spill] sm:$0xff] %v5858_v41 }
  0xc7   : > { %v2519_v36 = vrot.slane %v2517_v12, 7  ;;  %v2554_v0 = vrot.slane %v2552_v25, 7  ;;  %v2555_v12 = vshll.u32 %v5835_v38, 16  ;;  %v5377_v38 = vld [vmem:[%s5569_s25 + $0x8] sm:$0xff]  }
  0xc8   : > { %v1101_v4 = vsel %vm798_vm5, %v1091_v7, %v1100_v42  ;;  %v1114_v5 = vrot.slane %v1112_v20, 3  ;;  %v1117_v10 = vrot.slane %v1115_v62, 4  ;;  %v1110_v2 = vsel %vm798_vm5, %v1100_v42, %v1109_v29  ;;  %v5869_v62 = vld [vmem:[%s5782_s21 + $0x14] sm:$0xf] }
  0xc9   : > { %4880 = vmatmul.mubr.msk.bf16.gmra.mrb[4].mxu0 %vm693_vm1, %v4516_v35  ;;  %v5842_v35 = vrot.slane %v2416_v14, %v5571_v33  ;;  %v2520_v7 = vshll.u32 %v5829_v18, 16  ;;  %v5866_v20 = vrot.slane %v2561_v44, 7  ;;  %v2564_v42 = vshll.u32 %v5832_v32, 16 }
  0xca   : > { %4885 = vmatprep.mubr.msk.bf16.mxu0 %vm693_vm1, %v1092_v61  ;;  %v2527_v61 = vrot.slane %v2525_v28, 7  ;;  %v2545_v28 = vrot.slane %v2543_v11, 7  ;;  %v2868_v44 = vmul.bf16 %v5858_v41, %v5637_v60  ;;  %v1118_v25 = vor.u32 %v1117_v10, %v1114_v5 }
  0xcb   : > { %6709 = vst [vmem:[#allocation14_spill] sm:$0xff] %v5842_v35  ;;  %v2534_v14 = vshrl.u32 %v5842_v35, 16  ;;  %v2537_v11 = vshll.u32 %v5842_v35, 16  ;;  %v2557_v32 = vor.u32 %v2555_v12, %v2554_v0  ;;  %v2559_v27 = vrot.slane %v2554_v0, 4  ;;  %v3343_v0 = vld [vmem:[%s5782_s21 + $0x8] sm:$0xf] }
  0xcc   : > { %v2523_v40 = vrot.slane %v2519_v36, 4  ;;  %v2548_v18 = vor.u32 %v2546_v54, %v2545_v28  ;;  %v2550_v21 = vrot.slane %v2545_v28, 4  ;;  %v1119_v35 = vsel %vm798_vm5, %v1109_v29, %v1118_v25 }
  0xcd   : > { %v2536_v52 = vrot.slane %v2534_v14, 7  ;;  %v5885_v14 = vor.u32 %v2520_v7, %v2519_v36  ;;  %v2532_v54 = vrot.slane %v2527_v61, 4 }
  0xce   : > { %v5903_v28 = vsel %vm5895_vm8, %v2550_v21, %v2557_v32 }
  0xcf   : > { %v2539_v10 = vor.u32 %v2537_v11, %v2536_v52  ;;  %v1361_v11 = vsel %vm706_vm0, %v4540_v34, 0 }
  0xd1   : > { %4886 = vmatmul.mubr.msk.bf16.vlgmr.msra.gmra.mrb[0].mxu0 %vm693_vm1, %v1101_v4  ;;  %v5874_v4 = vrot.slane %v2476_v58, %v5571_v33  ;;  %v2570_v33 = vshrl.u32 %v5861_v49, 16  ;;  %v2566_v58 = vor.u32 %v2564_v42, %v5866_v20  ;;  %v2573_v42 = vshll.u32 %v5861_v49, 16 }
  0xd2   : > { %4894 = vmatpush3.bf16.msra.mxu0 %v1251_v56  ;;  %4889 = vmatprep.mubr.msk.bf16.mxu0 %vm693_vm1, %v1110_v2  ;;  %v2530_v56 = vor.u32 %v2528_v39, %v2527_v61  ;;  %v2867_v2 = vmul.bf16 %v5869_v62, %v5633_v59  ;;  %v2541_v39 = vrot.slane %v2536_v52, 4  ;;  %v3356_v61 = vmul.bf16 %v3343_v0, %v5885_v14 }
  0xd3   : > { %6712 = vst [vmem:[#allocation17_spill] sm:$0xff] %v5874_v4  ;;  %5330 = vmatprep.subr.msk.bf16.mxu0 %vm706_vm0, %v4540_v34  ;;  %v2579_v5 = vshrl.u32 %v5874_v4, 16  ;;  %v2572_v36 = vrot.slane %v2570_v33, 7  ;;  %v5907_v29 = vsel %vm5895_vm8, %v2559_v27, %v2566_v58  ;;  %v5918_v21 = vsel %vm5895_vm8, %v2532_v54, %v2539_v10  ;;  %v5928_v27 = vld [vmem:[%s5782_s21 + $0x1c] sm:$0xf] }
  0xd4   : > { %v5891_v43 = vcombine.low %v2867_v2, %v2868_v44  ;;  %v5922_v32 = vsel %vm5895_vm8, %v2541_v39, %v2548_v18  ;;  %v3361_v12 = vmul.bf16 %v5928_v27, %v5907_v29  ;;  %v2582_v44 = vshll.u32 %v5874_v4, 16  ;;  %v5379_v2 = vld [vmem:[%s5569_s25 + $0x18] sm:$0xff]   ;;  %v3344_v33 = vld [vmem:[%s5782_s21 + $0xc] sm:$0xf]  ;;  %v3345_v10 = vld [vmem:[%s5782_s21 + $0x10] sm:$0xf] }
  0xd5   : > { %v2581_v52 = vrot.slane %v2579_v5, 7  ;;  %v2575_v25 = vor.u32 %v2573_v42, %v2572_v36  ;;  %v2568_v18 = vrot.slane %v5866_v20, 4  ;;  %v2577_v5 = vrot.slane %v2572_v36, 4  ;;  %v3346_v39 = vld [vmem:[%s5782_s21 + $0x14] sm:$0xf] }
  0xd6   : > { %6713 = vst [vmem:[#allocation18_spill] sm:$0xff] %v5891_v43  ;;  %v5946_v54 = vld [vmem:[%s6664_s5 + $0xc] sm:$0x3]  ;;  %v3358_v34 = vmul.bf16 %v3345_v10, %v5918_v21  ;;  %v3359_v42 = vmul.bf16 %v3346_v39, %v5922_v32 }
  0xd7   : > { %v2584_v58 = vor.u32 %v2582_v44, %v2581_v52  ;;  %v5952_v20 = vsel %vm5895_vm8, %v2568_v18, %v2575_v25  ;;  %v5959_v43 = vrot.slane %v2581_v52, 4  ;;  %v1436_v25 = vld [vmem:[%s5600_s28 + $0x4] sm:$0x8] }
  0xd8   : > { %v5380_v18 = vld [vmem:[%s5569_s25 + $0x20] sm:$0xff]  }
  0xd9   : > { %4890 = vmatmul.mubr.msk.bf16.gmra.mrb[4].mxu0 %vm693_vm1, %v1119_v35  ;;  %v5913_v35 = vsel %vm5895_vm8, %v2523_v40, %v2530_v56  ;;  %v5378_v56 = vld [vmem:[%s5569_s25 + $0x10] sm:$0xff]   ;;  %v5963_v10 = vsel %vm5895_vm8, %v2577_v5, %v2584_v58 }
  0xda   : > { %4895 = vmatprep.mubr.msk.bf16.mxu0 %vm693_vm1, %v5377_v38  ;;  %v5925_v38 = vld [vmem:[%s5782_s21 + $0x18] sm:$0xf]  ;;  %v3357_v0 = vmul.bf16 %v3344_v33, %v5913_v35  ;;  %v5957_v33 = vld [vmem:[%s5600_s28 + $0x8] sm:$0xf] }
  0xdb   : > { %v3360_v40 = vmul.bf16 %v5925_v38, %v5903_v28  ;;  %v1446_v7 = vmul.bf16 %v5957_v33, %v5604_v19 }
  0xdc   : > { %v4662_v36 = vcombine.low %v3356_v61, %v3357_v0  ;;  %v4663_v61 = vcombine.low %v3358_v34, %v3359_v42  ;;  %v5977_v0 = vld [vmem:[%s5782_s21 + $0x24] sm:$0xf]  ;;  %v3627_v34 = vmul.bf16 %v5928_v27, %v5637_v60  ;;  %v1445_v42 = vmul.bf16 %v1436_v25, %v5585_v55 }
  0xdd   : > { %v4664_v44 = vcombine.low %v3360_v40, %v3361_v12  ;;  %v3349_v40 = vld [vmem:[%s5782_s21 + $0x20] sm:$0xf]  ;;  %v4541_v12 = vcombine.low %v5705_v53, %v5690_v47  ;;  %6716 = vst [vmem:[#allocation19_spill] sm:$0xff] %v5977_v0  ;;  %v3363_v53 = vmul.bf16 %v5977_v0, %v5963_v10 }
  0xde   : > { %v3362_v52 = vmul.bf16 %v3349_v40, %v5952_v20  ;;  %v3481_v58 = vshrl.u32 %v4662_v36, 16  ;;  %v3488_v39 = vshll.u32 %v4663_v61, 16  ;;  %v3492_v47 = vshrl.u32 %v4663_v61, 16 }
  0xdf   : > { %v4550_v60 = vcombine.low %v1445_v42, %v1446_v7 }
  0xe0   : > { %v3490_v49 = vrot.slane %v3488_v39, 1  ;;  %v4665_v41 = vcombine.low %v3362_v52, %v3363_v53  ;;  %v4107_v52 = vld [vmem:[%s5782_s21 + $0x20] sm:$0xf] }
  0xe1   : > { %4896 = vmatmul.mubr.msk.bf16.vlgmr.msra.gmra.mrb[0].mxu0 %vm693_vm1, %v5378_v56  ;;  %v3483_v56 = vshll.u32 %v4662_v36, 16  ;;  %v1480_v42 = vshrl.u32 %v4550_v60, 16 }
  0xe2   : > { %4904 = vmatpush3.bf16.msra.mxu0 %v1361_v11  ;;  %4899 = vmatprep.mubr.msk.bf16.mxu0 %vm693_vm1, %v5379_v2  ;;  %v3496_v11 = vshll.u32 %v4664_v44, 16  ;;  %v3351_v2 = vld [vmem:[%s5782_s21 + $0x28] sm:$0x1]  ;;  %v3494_v25 = vor.u32 %v3492_v47, %v3490_v49  ;;  %v1483_v47 = vshll.u32 %v4550_v60, 16 }
  0xe3   : > { %5331 = vmatprep.subr.msk.bf16.mxu0 %vm706_vm0, %v5946_v54  ;;  %v3485_v5 = vrot.slane %v3483_v56, 1  ;;  %v3364_v36 = vmul.bf16 %v3351_v2, %v5959_v43  ;;  %v3626_v56 = vmul.bf16 %v5925_v38, %v5633_v59  ;;  %v4106_v38 = vld [vmem:[%s5782_s21 + $0x1c] sm:$0xf] }
  0xe4   : > { %v3498_v4 = vrot.slane %v3496_v11, 1  ;;  %v3504_v11 = vshll.u32 %v4665_v41, 16 }
  0xe5   : > { %v3486_v40 = vor.u32 %v3485_v5, %v3481_v58  ;;  %v4666_v61 = vcombine.low %v3364_v36, %v3364_v36  ;;  %v3500_v58 = vshrl.u32 %v4664_v44, 16  ;;  %v4102_v5 = vld [vmem:[%s5782_s21 + $0xc] sm:$0xf]  ;;  %v5996_v59 = vcombine.low %v3626_v56, %v3627_v34  ;;  %v4103_v36 = vld [vmem:[%s5782_s21 + $0x10] sm:$0xf] }
  0xe6   : > { %v5994_v2 = vsel %vm2720_vm9, %v3494_v25, %v3498_v4  ;;  %v3506_v7 = vrot.slane %v3504_v11, 1  ;;  %v4543_v44 = vcombine.low %v5735_v16, %v5763_v37  ;;  %v4119_v56 = vmul.bf16 %v4106_v38, %v5903_v28  ;;  %v4559_v16 = vld [vmem:[%s6664_s5 + $0xe] sm:$0x3]  ;;  %v6018_v37 = vld [vmem:[%s5600_s28 + $0x24] sm:$0xf] }
  0xe7   : > { %v5989_v27 = vsel %vm2720_vm9, %v3486_v40, %v3490_v49  ;;  %6718 = vst [vmem:[#allocation21_spill] sm:$0xff] %v5994_v2  ;;  %v3512_v39 = vshll.u32 %v4666_v61, 16  ;;  %6719 = vst [vmem:[#allocation22_spill] sm:$0xff] %v5996_v59  ;;  %v3508_v49 = vshrl.u32 %v4665_v41, 16  ;;  %v4120_v41 = vmul.bf16 %v4107_v52, %v5907_v29  ;;  %v4105_v25 = vld [vmem:[%s5782_s21 + $0x18] sm:$0xf] }
  0xe8   : > { %6717 = vst [vmem:[#allocation20_spill] sm:$0xff] %v5989_v27  ;;  %v4116_v61 = vmul.bf16 %v4103_v36, %v5913_v35 }
  0xe9   : > { %4900 = vmatmul.mubr.msk.bf16.gmra.mrb[4].mxu0 %vm693_vm1, %v5380_v18  ;;  %v3502_v18 = vor.u32 %v3500_v58, %v3498_v4  ;;  %v3510_v34 = vor.u32 %v3508_v49, %v3506_v7  ;;  %v3514_v40 = vrot.slane %v3512_v39, 1  ;;  %v4115_v4 = vmul.bf16 %v4102_v5, %v5885_v14 }
  0xea   : > { %4905 = vmatprep.mubr.msk.bf16.mxu0 %vm693_vm1, %v4541_v12  ;;  %v4542_v12 = vcombine.low %v5698_v50, %v5730_v22  ;;  %v1536_v50 = vsel %vm706_vm0, %v5946_v54, 0  ;;  %v4104_v22 = vld [vmem:[%s5782_s21 + $0x14] sm:$0xf]  ;;  %v1482_v54 = vrot.slane %v1480_v42, 3  ;;  %v1485_v58 = vrot.slane %v1483_v47, 4 }
  0xeb   : > { %v6005_v53 = vsel %vm2720_vm9, %v3502_v18, %v3506_v7  ;;  %v6021_v60 = vsel %vm2720_vm9, %v3510_v34, %v3514_v40  ;;  %v4117_v11 = vmul.bf16 %v4104_v22, %v5918_v21  ;;  %v1453_v5 = vmul.bf16 %v6018_v37, %v5645_v63  ;;  %v4108_v18 = vld [vmem:[%s5782_s21 + $0x24] sm:$0xf]  ;;  %v4110_v47 = vld [vmem:[%s5782_s21 + $0x2c] sm:$0x1] }
  0xec   : > { %6720 = vst [vmem:[#allocation23_spill] sm:$0xff] %v6005_v53  ;;  %6721 = vst [vmem:[#allocation24_spill] sm:$0xff] %v6021_v60  ;;  %v4118_v39 = vmul.bf16 %v4105_v25, %v5922_v32  ;;  %v4706_v38 = vcombine.low %v4115_v4, %v4116_v61  ;;  %v4708_v52 = vcombine.low %v4119_v56, %v4120_v41  ;;  %v6742_v60 = vld [vmem:[#allocation5_spill] sm:$0xff] }
  0xed   : > { %v4544_v7 = vcombine.low %v5738_v8, %v5786_v17  ;;  %v4554_v34 = vcombine.low %v1453_v5, %v1453_v5  ;;  %v4123_v61 = vmul.bf16 %v4110_v47, %v5959_v43 }
  0xee   : > { %v4707_v49 = vcombine.low %v4117_v11, %v4118_v39  ;;  %v4242_v42 = vshll.u32 %v4706_v38, 16  ;;  %v4255_v36 = vshll.u32 %v4708_v52, 16  ;;  %v4240_v25 = vshrl.u32 %v4706_v38, 16 }
  0xef   : > { %v1515_v11 = vshrl.u32 %v4554_v34, 16  ;;  %v4710_v39 = vcombine.low %v4123_v61, %v4123_v61  ;;  %v4259_v38 = vshrl.u32 %v4708_v52, 16  ;;  %v6083_v61 = vld [vmem:[%s5782_s21 + $0x4] sm:$0xf] }
  0xf0   : > { %v4247_v40 = vshll.u32 %v4707_v49, 16  ;;  %v4244_v4 = vrot.slane %v4242_v42, 1  ;;  %v4251_v17 = vshrl.u32 %v4707_v49, 16  ;;  %v4257_v41 = vrot.slane %v4255_v36, 1 }
  0xf1   : > { %4906 = vmatmul.mubr.msk.bf16.vlgmr.msra.gmra.mrb[0].mxu0 %vm693_vm1, %v4542_v12  ;;  %v4109_v12 = vld [vmem:[%s5782_s21 + $0x28] sm:$0xf]  ;;  %v4271_v49 = vshll.u32 %v4710_v39, 16  ;;  %v1517_v36 = vrot.slane %v1515_v11, 3  ;;  %v4569_v11 = vcombine.low %v5957_v33, %v5693_v48  ;;  %v1918_v39 = vmul.bf16 %v6083_v61, %v5604_v19 }
  0xf2   : > { %4914 = vmatpush3.bf16.msra.mxu0 %v1536_v50  ;;  %4909 = vmatprep.mubr.msk.bf16.mxu0 %vm693_vm1, %v4543_v44  ;;  %v1486_v44 = vor.u32 %v1485_v58, %v1482_v54  ;;  %v4121_v50 = vmul.bf16 %v4108_v18, %v5952_v20  ;;  %v4122_v56 = vmul.bf16 %v4109_v12, %v5963_v10  ;;  %v4249_v8 = vrot.slane %v4247_v40, 1 }
  0xf3   : > { %5332 = vmatprep.subr.msk.bf16.mxu0 %vm706_vm0, %v4559_v16  ;;  %v4245_v54 = vor.u32 %v4244_v4, %v4240_v25  ;;  %v1518_v18 = vshll.u32 %v4554_v34, 16  ;;  %v1654_v40 = vsel %vm706_vm0, %v4559_v16, 0  ;;  %v4568_v34 = vld [vmem:[%s6664_s5 + $0x10] sm:$0x3]  ;;  %v4273_v25 = vrot.slane %v4271_v49, 1 }
  0xf4   : > { %v1495_v22 = vsel %vm798_vm5, %v1486_v44, %v5791_v30  ;;  %v4709_v58 = vcombine.low %v4121_v50, %v4122_v56  ;;  %v4253_v5 = vor.u32 %v4251_v17, %v4249_v8  ;;  %v4261_v44 = vor.u32 %v4259_v38, %v4257_v41  ;;  %v5385_v56 = vld [vmem:[%s5525_s22 + $0x8] sm:$0xff]   ;;  %v6099_v49 = vld [vmem:[%s5782_s21 + $0x1c] sm:$0xf] }
  0xf5   : > { %v6045_v30 = vsel %vm2720_vm9, %v4245_v54, %v4249_v8  ;;  %v1520_v50 = vrot.slane %v1518_v18, 4  ;;  %v1764_v17 = vsel %vm706_vm0, %v4568_v34, 0  ;;  %v5388_v54 = vld [vmem:[%s5525_s22 + $0x20] sm:$0xff]   ;;  %v1920_v18 = vmul.bf16 %v5808_v46, %v5611_v26  ;;  %6726 = vst [vmem:[#allocation29_spill] sm:$0xff] %v6099_v49 }
  0xf6   : > { %6722 = vst [vmem:[#allocation25_spill] sm:$0xff] %v6045_v30  ;;  %v4263_v12 = vshll.u32 %v4709_v58, 16  ;;  %v4267_v47 = vshrl.u32 %v4709_v58, 16  ;;  %v4570_v48 = vcombine.low %v5710_v57, %v5701_v51  ;;  %v6115_v57 = vld [vmem:[%s5782_s21 + $0x20] sm:$0xf] }
  0xf7   : > { %v1521_v4 = vor.u32 %v1520_v50, %v1517_v36  ;;  %v4571_v36 = vcombine.low %v5726_v13, %v5747_v23  ;;  %v1969_v13 = vshrl.u32 %v5819_v15, 16  ;;  %v1972_v23 = vshll.u32 %v5819_v15, 16 }
  0xf8   : > { %v4265_v42 = vrot.slane %v4263_v12, 1 }
  0xf9   : > { %4910 = vmatmul.mubr.msk.bf16.gmra.mrb[4].mxu0 %vm693_vm1, %v4544_v7  ;;  %v6048_v7 = vsel %vm2720_vm9, %v4253_v5, %v4257_v41  ;;  %v1522_v8 = vsel %vm798_vm5, %v5805_v45, %v1521_v4  ;;  %v1927_v41 = vld [vmem:[%s6666_s7] sm:$0xf]  ;;  %v6079_v45 = vld [vmem:[%s5782_s21 + $0x8] sm:$0xf] }
  0xfa   : > { %4915 = vmatprep.mubr.msk.bf16.mxu0 %vm693_vm1, %v1495_v22  ;;  %6723 = vst [vmem:[#allocation26_spill] sm:$0xff] %v6048_v7  ;;  %v6055_v52 = vsel %vm2720_vm9, %v4261_v44, %v4265_v42  ;;  %v4269_v22 = vor.u32 %v4267_v47, %v4265_v42  ;;  %v1919_v58 = vmul.bf16 %v6079_v45, %v5616_v31  ;;  %v1880_v5 = vld [vmem:[%s5782_s21] sm:$0x8]  ;;  %v6102_v42 = vld [vmem:[%s5782_s21 + $0x18] sm:$0xf] }
  0xfb   : > { %6724 = vst [vmem:[#allocation27_spill] sm:$0xff] %v6055_v52  ;;  %v1917_v38 = vmul.bf16 %v1880_v5, %v5585_v55  ;;  %v1971_v5 = vrot.slane %v1969_v13, 3  ;;  %v6741_v52 = vld [vmem:[#allocation16_spill] sm:$0xff] }
  0xfc   : > { %v6062_v16 = vsel %vm2720_vm9, %v4269_v22, %v4273_v25  ;;  %v4582_v12 = vcombine.low %v1919_v58, %v1920_v18  ;;  %v2009_v22 = vsel %vm2007_vm10, %v1927_v41, 0  ;;  %v1923_v25 = vmul.bf16 %v6102_v42, %v5659_v9 }
  0xfd   : > { %6725 = vst [vmem:[#allocation28_spill] sm:$0xff] %v6062_v16  ;;  %v4581_v44 = vcombine.low %v1917_v38, %v1918_v39  ;;  %v1974_v39 = vrot.slane %v1972_v23, 4 }
  0xfe   : > { %v1960_v33 = vshrl.u32 %v4582_v12, 16  ;;  %v1963_v47 = vshll.u32 %v4582_v12, 16 }
  0xff   : > { %v1952_v50 = vshrl.u32 %v4581_v44, 16 }
 0x100   : > { %v1962_v4 = vrot.slane %v1960_v33, 3 }
 0x101   : > { %4916 = vmatmul.mubr.msk.bf16.vlgmr.msra.gmra.mrb[0].mxu0 %vm693_vm1, %v5803_v6  ;;  %v5386_v6 = vld [vmem:[%s5525_s22 + $0x10] sm:$0xff]  }
 0x102   : > { %4924 = vmatpush3.bf16.msra.mxu0 %v1654_v40  ;;  %4919 = vmatprep.mubr.msk.bf16.mxu0 %vm693_vm1, %v5817_v1  ;;  %v5387_v1 = vld [vmem:[%s5525_s22 + $0x18] sm:$0xff]   ;;  %v1924_v40 = vmul.bf16 %v6099_v49, %v5649_v3 }
 0x103   : > { %5333 = vmatprep.subr.msk.bf16.mxu0 %vm706_vm0, %v4568_v34  ;;  %v1955_v34 = vshll.u32 %v4581_v44, 16  ;;  %v1975_v44 = vor.u32 %v1974_v39, %v1971_v5  ;;  %v6177_v39 = vld [vmem:[%s5782_s21 + $0x8] sm:$0xf] }
 0x104   : > { %v4584_v51 = vcombine.low %v1923_v25, %v1924_v40  ;;  %v1926_v25 = vld [vmem:[%s6665_s6] sm:$0xf] }
 0x106   : > { %v1981_v58 = vshll.u32 %v4584_v51, 16 }
 0x108   : > { %v1983_v15 = vrot.slane %v1981_v58, 4 }
 0x109   : > { %4920 = vmatmul.mubr.msk.bf16.gmra.mrb[4].mxu0 %vm693_vm1, %v1522_v8  ;;  %v1954_v8 = vrot.slane %v1952_v50, 3 }
 0x10a   : > { %4925 = vmatprep.mubr.msk.bf16.mxu0 %vm693_vm1, %v5385_v56  ;;  %v1965_v56 = vrot.slane %v1963_v47, 4 }
 0x111   : > { %4926 = vmatmul.mubr.msk.bf16.vlgmr.msra.gmra.mrb[0].mxu0 %vm693_vm1, %v5386_v6  ;;  %v1957_v6 = vrot.slane %v1955_v34, 4 }
 0x112   : > { %4934 = vmatpush3.bf16.msra.mxu0 %v1764_v17  ;;  %4929 = vmatprep.mubr.msk.bf16.mxu0 %vm693_vm1, %v5387_v1  ;;  %v1925_v1 = vmul.bf16 %v6115_v57, %v5645_v63  ;;  %v4572_v17 = vcombine.low %v5750_v24, %v6018_v37 }
 0x113   : > { %5334 = vmatprep.subr.msk.bf16.mxu0 %vm2007_vm10, %v1927_v41  ;;  %v1966_v41 = vor.u32 %v1965_v56, %v1962_v4  ;;  %v2089_v4 = vsel %vm2007_vm10, %v1926_v25, 0  ;;  %v6153_v56 = vld [vmem:[%s6665_s6 + $0x8] sm:$0xf] }
 0x114   : > { %v4585_v18 = vcombine.low %v1925_v1, %v1925_v1  ;;  %5339 = vmatprep.subr.msk.bf16.mxu1 %vm2007_vm10, %v6153_v56 }
 0x115   : > { %v1976_v37 = vsel %vm798_vm5, %v1966_v41, %v1975_v44 }
 0x116   : > { %v1990_v33 = vshll.u32 %v4585_v18, 16 }
 0x118   : > { %v1992_v40 = vrot.slane %v1990_v33, 4 }
 0x119   : > { %4930 = vmatmul.mubr.msk.bf16.gmra.mrb[4].mxu0 %vm693_vm1, %v5388_v54  ;;  %v1978_v54 = vshrl.u32 %v4584_v51, 16  ;;  %v6159_v51 = vsel %vm2007_vm10, %v6153_v56, 0 }
 0x11a   : > { %4935 = vmatprep.mubr.msk.bf16.mxu0 %vm693_vm1, %v4569_v11  ;;  %v1958_v11 = vor.u32 %v1957_v6, %v1954_v8  ;;  %5124 = vmatpush3.bf16.msra.mxu1 %v6159_v51  ;;  %v6165_v8 = vld [vmem:[%s6666_s7 + $0x8] sm:$0xf]  ;;  %v4594_v6 = vld [vmem:[%s6665_s6 + $0x4] sm:$0xf] }
 0x11b   : > { %v1980_v12 = vrot.slane %v1978_v54, 3  ;;  %5340 = vmatprep.subr.msk.bf16.mxu1 %vm2007_vm10, %v6165_v8  ;;  %v2770_v63 = vsel %vm2007_vm10, %v6165_v8, 0 }
 0x11c   : > { %v1967_v38 = vsel %vm798_vm5, %v1958_v11, %v1966_v41 }
 0x11d   : > { %v1984_v24 = vor.u32 %v1983_v15, %v1980_v12  ;;  %v6185_v12 = vld [vmem:[%s5782_s21 + $0xc] sm:$0xf]  ;;  %v6188_v15 = vld [vmem:[%s5782_s21 + $0x10] sm:$0xf] }
 0x121   : > { %4936 = vmatmul.mubr.msk.bf16.vlgmr.msra.gmra.mrb[0].mxu0 %vm693_vm1, %v4570_v48  ;;  %v1987_v48 = vshrl.u32 %v4585_v18, 16 }
 0x122   : > { %4939 = vmatprep.mubr.msk.bf16.mxu0 %vm693_vm1, %v4571_v36  ;;  %4944 = vmatpush3.bf16.msra.mxu0 %v2009_v22  ;;  %v1985_v36 = vsel %vm798_vm5, %v1975_v44, %v1984_v24  ;;  %v5417_v22 = vmov 0.0   ;;  %v2598_v44 = vmul.bf16 %v5918_v21, %v6185_v12 }
 0x123   : > { %v1989_v47 = vrot.slane %v1987_v48, 3  ;;  %1844 = vst.msk [vmem:[#allocation2 + $0x20] sm:$0xff] %vm1839_vm11, %v5417_v22  ;;  %1840 = vst.msk [vmem:[#allocation2] sm:$0xff] %vm1839_vm11, %v5417_v22  ;;  %5335 = vmatprep.subr.msk.bf16.mxu0 %vm2007_vm10, %v1926_v25  ;;  %v2599_v48 = vmul.bf16 %v5922_v32, %v6188_v15 }
 0x124   : > { %1841 = vst.msk [vmem:[#allocation2 + $0x8] sm:$0xff] %vm1839_vm11, %v5417_v22  ;;  %1842 = vst.msk [vmem:[#allocation2 + $0x10] sm:$0xff] %vm1839_vm11, %v5417_v22 }
 0x125   : > { %v1993_v50 = vor.u32 %v1992_v40, %v1989_v47  ;;  %1843 = vst.msk [vmem:[#allocation2 + $0x18] sm:$0xff] %vm1839_vm11, %v5417_v22  ;;  %1845 = vst.msk [vmem:[#allocation2 + $0x28] sm:$0xff] %vm1839_vm11, %v5417_v22 }
 0x126   : > { %1846 = vst.msk [vmem:[#allocation2 + $0x30] sm:$0xff] %vm1839_vm11, %v5417_v22  ;;  %1847 = vst.msk [vmem:[#allocation2 + $0x38] sm:$0xff] %vm1839_vm11, %v5417_v22 }
 0x127   : > { %v1994_v34 = vsel %vm798_vm5, %v1984_v24, %v1993_v50  ;;  %1848 = vst.msk [vmem:[#allocation2 + $0x40] sm:$0xff] %vm1839_vm11, %v5417_v22  ;;  %1849 = vst.msk [vmem:[#allocation2 + $0x48] sm:$0xff] %vm1839_vm11, %v5417_v22 }
 0x128   : > { %1850 = vst.msk [vmem:[#allocation2 + $0x50] sm:$0xff] %vm1839_vm11, %v5417_v22  ;;  %1851 = vst.msk [vmem:[#allocation2 + $0x58] sm:$0xff] %vm1839_vm11, %v5417_v22  ;;  %v6197_v22 = vcombine.low %v2598_v44, %v2599_v48 }
 0x129   : > { %4940 = vmatmul.mubr.msk.bf16.gmra.mrb[4].mxu0 %vm693_vm1, %v4572_v17  ;;  %v2380_v17 = vld [vmem:[%s5782_s21 + $0x4] sm:$0xf] }
 0x12a   : > { %4945 = vmatprep.mubr.msk.bf16.mxu0 %vm1839_vm11, %v1967_v38  ;;  %v2596_v18 = vmul.bf16 %v5885_v14, %v2380_v17  ;;  %v2597_v38 = vmul.bf16 %v5913_v35, %v6177_v39  ;;  %v6727_v17 = vld [vmem:[#allocation15_spill] sm:$0xff] }
 0x12c   : > { %v4618_v47 = vcombine.low %v2596_v18, %v2597_v38  ;;  %v6731_v18 = vld [vmem:[#allocation9_spill] sm:$0xff]  ;;  %v6732_v38 = vld [vmem:[#allocation10_spill] sm:$0xff] }
 0x12d   : > { %v6222_v44 = vcombine.low %v6732_v38, %v6731_v18  ;;  %v2156_v18 = vld [vmem:[#allocation2 + $0x8] sm:$0xff] }
 0x12f   : > { %6733 = vst [vmem:[#allocation9_spill] sm:$0xff] %v6222_v44 }
 0x131   : > { %4946 = vmatmul.mubr.msk.bf16.vlgmr.msra.gmra.mrb[8].mxu0 %vm1839_vm11, %v1976_v37  ;;  %v1868_v37 = vld [vmem:[#allocation2 + $0x7] sm:$0xff] }
 0x132   : > { %4949 = vmatprep.mubr.msk.bf16.mxu0 %vm1839_vm11, %v1985_v36  ;;  %4954 = vmatpush3.bf16.msra.mxu0 %v2089_v4 }
 0x133   : > { %5336 = vmatprep.subr.msk.bf16.mxu0 %vm2007_vm10, %v4594_v6 }
 0x139   : > { %4950 = vmatmul.mubr.msk.bf16.gmra.mrb[12].mxu0 %vm1839_vm11, %v1994_v34 }
 0x1f4   : > { %v4937_v13 = vpop.f32.mrb[0].mxu0 }
 0x1f5   : > { %v1854_v23 = vmax.f32 %v4937_v13, 0.0  ;;  %v1800_v1 = vpop.f32.mrb[1].mxu0 }
 0x1f6   : > { %v1852_v41 = vmax.f32 %v1800_v1, 0.0  ;;  %v4938_v54 = vpop.f32.mrb[2].mxu0  ;;  %v2600_v1 = vmul.bf16 %v5903_v28, %v5869_v62  ;;  %v2729_v62 = vshll.u32 %v6197_v22, 16 }
 0x1f7   : > { %1862 = vst.msk [vmem:[#allocation2 + $0x20] sm:$0xff] %vm1839_vm11, %v1854_v23  ;;  %v1855_v58 = vmax.f32 %v4938_v54, 0.0  ;;  %v1803_v11 = vpop.f32.mrb[3].mxu0  ;;  %v2724_v23 = vshll.u32 %v4618_v47, 16  ;;  %v6728_v54 = vld [vmem:[#allocation4_spill] sm:$0xff] }
 0x1f8   : > { %1860 = vst.msk [vmem:[#allocation2 + $0x10] sm:$0xff] %vm1839_vm11, %v1852_v41  ;;  %v1853_v5 = vmax.f32 %v1803_v11, 0.0  ;;  %v2601_v41 = vmul.bf16 %v5907_v29, %v6727_v17  ;;  %v6735_v29 = vld [vmem:[#allocation3_spill] sm:$0xff]  ;;  %v6255_v17 = vrot.slane %v2729_v62, 1  ;;  %v6736_v62 = vld [vmem:[#allocation13_spill] sm:$0xff] }
 0x1f9   : > { %1863 = vst.msk [vmem:[#allocation2 + $0x28] sm:$0xff] %vm1839_vm11, %v1855_v58 }
 0x1fa   : > { %1861 = vst.msk [vmem:[#allocation2 + $0x18] sm:$0xff] %vm1839_vm11, %v1853_v5 }
 0x1fc   : > { %v4941_v33 = vpop.f32.mrb[4].mxu0 }
 0x1fd   : > { %v1858_v24 = vmax.f32 %v4941_v33, 0.0  ;;  %v1816_v14 = vpop.f32.mrb[5].mxu0  ;;  %v2183_v33 = vsel %vm2007_vm10, %v4594_v6, 0  ;;  %v6249_v6 = vld [vmem:[%s5782_s21 + $0x20] sm:$0xf] }
 0x1fe   : > { %v1856_v40 = vmax.f32 %v1816_v14, 0.0  ;;  %v4942_v36 = vpop.f32.mrb[6].mxu0  ;;  %v2726_v14 = vrot.slane %v2724_v23, 1  ;;  %v2722_v23 = vshrl.u32 %v4618_v47, 16 }
 0x1ff   : > { %1866 = vst.msk [vmem:[#allocation2 + $0x40] sm:$0xff] %vm1839_vm11, %v1858_v24  ;;  %v1859_v35 = vmax.f32 %v4942_v36, 0.0  ;;  %v1819_v50 = vpop.f32.mrb[7].mxu0  ;;  %v6195_v34 = vld [vmem:[#allocation2 + $0xf] sm:$0xff]  ;;  %v6243_v36 = vcombine.low %v2600_v1, %v2601_v41  ;;  %v2603_v1 = vmul.bf16 %v5963_v10, %v6249_v6 }
 0x200   : > { %1864 = vst.msk [vmem:[#allocation2 + $0x30] sm:$0xff] %vm1839_vm11, %v1856_v40  ;;  %v1857_v21 = vmax.f32 %v1819_v50, 0.0  ;;  %v1876_v32 = vpack.c.bf16 %v6195_v34, %v1868_v37  ;;  %v6201_v25 = vld [vmem:[#allocation2 + $0x21] sm:$0xff]  ;;  %v6740_v10 = vld [vmem:[#allocation17_spill] sm:$0xff] }
 0x201   : > { %1867 = vst.msk [vmem:[#allocation2 + $0x48] sm:$0xff] %vm1839_vm11, %v1859_v35  ;;  %v6204_v4 = vld [vmem:[#allocation2 + $0x17] sm:$0xff]  ;;  %v6206_v13 = vld [vmem:[#allocation2 + $0x1f] sm:$0xff]  ;;  %v6251_v50 = vld [vmem:[#allocation2 + $0x27] sm:$0xff]  ;;  %v4611_v7 = vcombine.low %v6741_v52, %v6740_v10  ;;  %v2737_v52 = vshll.u32 %v6243_v36, 16 }
 0x202   : > { %1865 = vst.msk [vmem:[#allocation2 + $0x38] sm:$0xff] %vm1839_vm11, %v1857_v21  ;;  %v1913_v58 = vmul.bf16 %v6728_v54, %v1876_v32  ;;  %v6216_v11 = vpack.c.bf16 %v6206_v13, %v6204_v4  ;;  %v6218_v5 = vld [vmem:[#allocation2 + $0x19] sm:$0xff]  ;;  %v6238_v37 = vld [vmem:[%s6666_s7 + $0x4] sm:$0xf]  ;;  %v6739_v24 = vld [vmem:[#allocation12_spill] sm:$0xff] }
 0x203   : > { %6730 = vst [vmem:[#allocation4_spill] sm:$0xff] %v6218_v5  ;;  %v6227_v28 = vpack.c.bf16 %v6201_v25, %v6218_v5  ;;  %v6246_v35 = vld [vmem:[%s5782_s21 + $0x1c] sm:$0xf] }
 0x204   : > { %6729 = vst [vmem:[#allocation15_spill] sm:$0xff] %v6216_v11  ;;  %4955 = vmatprep.mubr.msk.bf16.mxu0 %vm1839_vm11, %v1913_v58  ;;  %v1914_v48 = vmul.bf16 %v6735_v29, %v6216_v11  ;;  %v2602_v58 = vmul.bf16 %v5952_v20, %v6246_v35  ;;  %v6738_v20 = vld [vmem:[#allocation11_spill] sm:$0xff]  ;;  %v2727_v11 = vor.u32 %v2726_v14, %v2722_v23 }
 0x205   : > { %6734 = vst [vmem:[#allocation10_spill] sm:$0xff] %v6227_v28  ;;  %v6275_v16 = vcombine.low %v6739_v24, %v6738_v20  ;;  %v6291_v24 = vld [vmem:[#allocation2 + $0x10] sm:$0xff] }
 0x206   : > { %4956 = vmatmul.mubr.msk.bf16.vlgmr.msra.gmra.mrb[8].mxu0 %vm1839_vm11, %v1914_v48  ;;  %v2388_v48 = vld [vmem:[%s5782_s21 + $0x24] sm:$0x1]  ;;  %v2732_v14 = vsel %vm2720_vm9, %v2727_v11, %v6255_v17  ;;  %v4621_v23 = vcombine.low %v2602_v58, %v2603_v1  ;;  %v2164_v11 = vpack.c.bf16 %v6291_v24, %v2156_v18 }
 0x207   : > { %v6253_v21 = vld [vmem:[#allocation2 + $0x2f] sm:$0xff]  ;;  %4964 = vmatpush3.bf16.msra.mxu0 %v2183_v33  ;;  %v6737_v33 = vld [vmem:[#allocation14_spill] sm:$0xff]  ;;  %v2604_v2 = vmul.bf16 %v5959_v43, %v2388_v48 }
 0x208   : > { %v2372_v32 = vld [vmem:[#allocation2 + $0x29] sm:$0xff]  ;;  %v6263_v41 = vpack.c.bf16 %v6253_v21, %v6251_v50  ;;  %v2375_v38 = vld [vmem:[#allocation2 + $0x41] sm:$0xff]  ;;  %5337 = vmatprep.subr.msk.bf16.mxu0 %vm2007_vm10, %v6238_v37  ;;  %v6271_v40 = vcombine.low %v6737_v33, %v6736_v62  ;;  %v4097_v48 = vld [vmem:[#allocation2 + $0x51] sm:$0xff] }
 0x209   : > { %v3340_v47 = vpack.c.bf16 %v2372_v32, %v6201_v25  ;;  %v6279_v30 = vld [vmem:[#allocation2 + $0x37] sm:$0xff]  ;;  %v6281_v59 = vld [vmem:[#allocation2 + $0x3f] sm:$0xff]  ;;  %v3338_v10 = vld [vmem:[#allocation2 + $0x49] sm:$0xff] }
 0x20a   : > { %v2373_v0 = vld [vmem:[#allocation2 + $0x31] sm:$0xff]  ;;  %v1915_v25 = vmul.bf16 %v6742_v60, %v6263_v41  ;;  %v6287_v62 = vpack.c.bf16 %v6281_v59, %v6279_v30  ;;  %v2374_v20 = vld [vmem:[#allocation2 + $0x39] sm:$0xff]  ;;  %v6299_v27 = vld [vmem:[#allocation2 + $0x47] sm:$0xff]  ;;  %v3342_v1 = vpack.c.bf16 %v3338_v10, %v2375_v38 }
 0x20b   : > { %v6289_v33 = vpack.c.bf16 %v2373_v0, %v2372_v32  ;;  %v6294_v53 = vpack.c.bf16 %v2375_v38, %v2374_v20  ;;  %v3611_v5 = vld [vmem:[#allocation2 + $0x4f] sm:$0xff]  ;;  %v6743_v32 = vld [vmem:[#allocation6_spill] sm:$0xff]  ;;  %v6309_v49 = vmul.bf16 %v6271_v40, %v3340_v47  ;;  %v3341_v58 = vpack.c.bf16 %v2374_v20, %v2373_v0 }
 0x20c   : > { %4959 = vmatprep.mubr.msk.bf16.mxu0 %vm1839_vm11, %v1915_v25  ;;  %v1916_v28 = vmul.bf16 %v6743_v32, %v6287_v62  ;;  %v4627_v25 = vld [vmem:[%s6665_s6 + $0xc] sm:$0xf]  ;;  %v3615_v18 = vpack.c.bf16 %v3611_v5, %v6299_v27  ;;  %v2745_v0 = vshll.u32 %v4621_v23, 16  ;;  %v6342_v47 = vld [vmem:[#allocation2 + $0x30] sm:$0xff] }
 0x20d   : > { %v2511_v44 = vmul.bf16 %v6275_v16, %v6289_v33  ;;  %v2512_v43 = vmul.bf16 %v4611_v7, %v6294_v53  ;;  %v4113_v5 = vmul.bf16 %v6275_v16, %v6294_v53 }
 0x20e   : > { %4960 = vmatmul.mubr.msk.bf16.gmra.mrb[12].mxu0 %vm1839_vm11, %v1916_v28  ;;  %v6326_v28 = vmul.bf16 %v6275_v16, %v3341_v58  ;;  %v6334_v20 = vmul.bf16 %v6743_v32, %v3615_v18  ;;  %v2739_v58 = vrot.slane %v2737_v52, 1  ;;  %v2747_v18 = vrot.slane %v2745_v0, 1  ;;  %v4632_v0 = vld [vmem:[%s6666_s7 + $0xc] sm:$0xf] }
 0x20f   : > { %4989 = vmatprep.mubr.msk.bf16.mxu1 %vm1839_vm11, %v2511_v44  ;;  %4965 = vmatprep.mubr.msk.bf16.mxu0 %vm1839_vm11, %v2164_v11  ;;  %v6328_v44 = vmul.bf16 %v4611_v7, %v3342_v1  ;;  %v4101_v11 = vpack.c.bf16 %v4097_v48, %v3338_v10  ;;  %v2733_v1 = vshrl.u32 %v6197_v22, 16  ;;  %v6354_v48 = vld [vmem:[#allocation2 + $0x28] sm:$0xff]  ;;  %v4622_v52 = vcombine.low %v2604_v2, %v2604_v2 }
 0x210   : > { %4990 = vmatmul.mubr.msk.bf16.vlgmr.msra.gmra.mrb[0].mxu1 %vm1839_vm11, %v2512_v43  ;;  %v6338_v43 = vld [vmem:[#allocation2 + $0x18] sm:$0xff]  ;;  %v6358_v22 = vpack.c.bf16 %v6342_v47, %v6354_v48 }
 0x211   : > { %4994 = vmatpush3.bf16.msra.mxu1 %v2770_v63  ;;  %4995 = vmatprep.mubr.msk.bf16.mxu1 %vm1839_vm11, %v2732_v14  ;;  %v6344_v38 = vmul.bf16 %v4611_v7, %v4101_v11  ;;  %v6346_v63 = vld [vmem:[#allocation2 + $0x20] sm:$0xff]  ;;  %v2741_v14 = vshrl.u32 %v6243_v36, 16  ;;  %v2735_v8 = vor.u32 %v2733_v1, %v6255_v17  ;;  %v2887_v7 = vsel %vm2007_vm10, %v4627_v25, 0 }
 0x212   : > { %5341 = vmatprep.subr.msk.bf16.mxu1 %vm2007_vm10, %v4627_v25  ;;  %v6352_v10 = vpack.c.bf16 %v6346_v63, %v6338_v43  ;;  %v2293_v17 = vsel %vm2007_vm10, %v6238_v37, 0  ;;  %v2749_v25 = vshrl.u32 %v4621_v23, 16  ;;  %v2853_v1 = vpack.c.bf16 %v6204_v4, %v6195_v34 }
 0x213   : > { %v2743_v11 = vor.u32 %v2741_v14, %v2739_v58  ;;  %v2740_v36 = vsel %vm2720_vm9, %v2735_v8, %v2739_v58  ;;  %v2753_v8 = vshll.u32 %v4622_v52, 16  ;;  %v6374_v58 = vld [vmem:[#allocation2 + $0x38] sm:$0xff]  ;;  %v6381_v14 = vld [vmem:[#allocation2 + $0x40] sm:$0xff]  ;;  %v2865_v23 = vmul.bf16 %v6185_v12, %v5616_v31 }
 0x214   : > { %v2751_v37 = vor.u32 %v2749_v25, %v2747_v18  ;;  %v6389_v52 = vpack.c.bf16 %v6381_v14, %v6374_v58  ;;  %v2864_v34 = vmul.bf16 %v6177_v39, %v5604_v19  ;;  %v2855_v25 = vpack.c.bf16 %v6279_v30, %v6253_v21  ;;  %v6744_v30 = vld [vmem:[#allocation8_spill] sm:$0xff] }
 0x215   : > { %v2748_v2 = vsel %vm2720_vm9, %v2743_v11, %v2747_v18  ;;  %v2755_v18 = vrot.slane %v2753_v8, 1  ;;  %v2857_v11 = vld [vmem:[%s5782_s21 + $0x4] sm:$0x8]  ;;  %v5397_v8 = vld [vmem:[%s5782_s21 + $0x14] sm:$0xf]  ;;  %v6745_v21 = vcombine.low %v5808_v46, %v6744_v30  ;;  %v2368_v46 = vld [vmem:[#allocation2 + $0x9] sm:$0xff] }
 0x216   : > { %4966 = vmatmul.mubr.msk.bf16.vlgmr.msra.gmra.mrb[8].mxu0 %vm1839_vm11, %v6352_v10  ;;  %v2863_v4 = vmul.bf16 %v2857_v11, %v5585_v55 }
 0x217   : > { %4969 = vmatprep.mubr.msk.bf16.mxu0 %vm1839_vm11, %v6358_v22  ;;  %4974 = vmatpush3.bf16.msra.mxu0 %v2293_v17  ;;  %v2854_v17 = vpack.c.bf16 %v6251_v50, %v6206_v13  ;;  %v3044_v13 = vsel %vm2007_vm10, %v4632_v0, 0 }
 0x218   : > { %4996 = vmatmul.mubr.msk.bf16.vlgmr.msra.gmra.mrb[4].mxu1 %vm1839_vm11, %v2740_v36  ;;  %5338 = vmatprep.subr.msk.bf16.mxu0 %vm2007_vm10, %v6153_v56  ;;  %v2866_v56 = vmul.bf16 %v6188_v15, %v5611_v26 }
 0x219   : > { %5004 = vmatpush3.bf16.msra.mxu1 %v2887_v7  ;;  %4999 = vmatprep.mubr.msk.bf16.mxu1 %vm1839_vm11, %v2748_v2  ;;  %v4600_v7 = vcombine.low %v6083_v61, %v6079_v45  ;;  %v2756_v45 = vsel %vm2720_vm9, %v2751_v37, %v2755_v18  ;;  %v2859_v61 = vmul.bf16 %v6728_v54, %v2853_v1 }
 0x21a   : > { %5342 = vmatprep.subr.msk.bf16.mxu1 %vm2007_vm10, %v4632_v0  ;;  %v4634_v36 = vcombine.low %v2865_v23, %v2866_v56  ;;  %v4633_v2 = vcombine.low %v2863_v4, %v2864_v34  ;;  %v4602_v37 = vcombine.low %v5397_v8, %v6102_v42  ;;  %v2869_v23 = vmul.bf16 %v6246_v35, %v5659_v9  ;;  %v6421_v56 = vld [vmem:[#allocation2 + $0x11] sm:$0xff] }
 0x21b   : > { %v2860_v11 = vmul.bf16 %v6735_v29, %v2854_v17  ;;  %v2861_v42 = vmul.bf16 %v6742_v60, %v2855_v25  ;;  %v2376_v17 = vpack.c.bf16 %v6421_v56, %v2368_v46 }
 0x21c   : > { %v2996_v1 = vshrl.u32 %v4634_v36, 16  ;;  %v2999_v18 = vshll.u32 %v4634_v36, 16  ;;  %v2988_v50 = vshrl.u32 %v4633_v2, 16  ;;  %v2991_v34 = vshll.u32 %v4633_v2, 16  ;;  %v6429_v36 = vld [vmem:[%s5782_s21 + $0x24] sm:$0xf] }
 0x21d   : > { %v2856_v2 = vpack.c.bf16 %v6299_v27, %v6281_v59  ;;  %v6749_v27 = vld [vmem:[#allocation9_spill] sm:$0xff] }
 0x21e   : > { %4970 = vmatmul.mubr.msk.bf16.gmra.mrb[12].mxu0 %vm1839_vm11, %v6389_v52  ;;  %v2998_v0 = vrot.slane %v2996_v1, 3  ;;  %v2990_v25 = vrot.slane %v2988_v50, 3  ;;  %v2993_v8 = vrot.slane %v2991_v34, 4  ;;  %v2509_v59 = vmul.bf16 %v6749_v27, %v2376_v17 }
 0x21f   : > { %4975 = vmatprep.mubr.msk.bf16.mxu0 %vm1839_vm11, %v4600_v7  ;;  %v2870_v7 = vmul.bf16 %v6249_v6, %v5649_v3  ;;  %v2862_v50 = vmul.bf16 %v6743_v32, %v2856_v2  ;;  %v6750_v2 = vld [vmem:[#allocation10_spill] sm:$0xff] }
 0x220   : > { %5000 = vmatmul.mubr.msk.bf16.gmra.mrb[0].mxu1 %vm1839_vm11, %v2756_v45  ;;  %v4642_v45 = vld [vmem:[%s6665_s6 + $0x10] sm:$0xf] }
 0x221   : > { %5005 = vmatprep.mubr.msk.bf16.mxu1 %vm1839_vm11, %v2859_v61  ;;  %v3001_v61 = vrot.slane %v2999_v18, 4  ;;  %v4636_v4 = vcombine.low %v2869_v23, %v2870_v7  ;;  %v6747_v18 = vld [vmem:[#allocation18_spill] sm:$0xff] }
 0x222   : > { %v3005_v7 = vshrl.u32 %v6747_v18, 16  ;;  %v3008_v23 = vshll.u32 %v6747_v18, 16 }
 0x223   : > { %v3002_v30 = vor.u32 %v3001_v61, %v2998_v0 }
 0x224   : > { %v3007_v34 = vrot.slane %v3005_v7, 3  ;;  %v3010_v46 = vrot.slane %v3008_v23, 4 }
 0x226   : > { %4976 = vmatmul.mubr.msk.bf16.vlgmr.msra.gmra.mrb[8].mxu0 %vm1839_vm11, %v6745_v21  ;;  %v3014_v21 = vshrl.u32 %v4636_v4, 16  ;;  %v3011_v61 = vor.u32 %v3010_v46, %v3007_v34  ;;  %v4656_v34 = vld [vmem:[%s6665_s6 + $0x14] sm:$0xf] }
 0x227   : > { %4979 = vmatprep.mubr.msk.bf16.mxu0 %vm1839_vm11, %v4602_v37  ;;  %4984 = vmatpush3.bf16.msra.mxu0 %v6159_v51  ;;  %v6746_v37 = vld [vmem:[#allocation29_spill] sm:$0xff]  ;;  %v2994_v51 = vor.u32 %v2993_v8, %v2990_v25  ;;  %v2510_v25 = vmul.bf16 %v6271_v40, %v6750_v2  ;;  %v3146_v8 = vsel %vm2007_vm10, %v4642_v45, 0 }
 0x228   : > { %5006 = vmatmul.mubr.msk.bf16.vlgmr.msra.gmra.mrb[4].mxu1 %vm1839_vm11, %v2860_v11  ;;  %v4603_v1 = vcombine.low %v6746_v37, %v6115_v57  ;;  %v6748_v11 = vld [vmem:[#allocation7_spill] sm:$0xff]  ;;  %v3016_v18 = vrot.slane %v3014_v21, 3 }
 0x229   : > { %5014 = vmatpush3.bf16.msra.mxu1 %v3044_v13  ;;  %5009 = vmatprep.mubr.msk.bf16.mxu1 %vm1839_vm11, %v2861_v42  ;;  %v2871_v13 = vmul.bf16 %v6429_v36, %v6748_v11  ;;  %v3017_v42 = vshll.u32 %v4636_v4, 16  ;;  %v3003_v37 = vsel %vm798_vm5, %v2994_v51, %v3002_v30  ;;  %v3129_v51 = vpack.c.bf16 %v6374_v58, %v6342_v47  ;;  %v5398_v47 = vld [vmem:[%s5782_s21 + $0x14] sm:$0xf]  ;;  %v5399_v58 = vld [vmem:[%s5782_s21 + $0x18] sm:$0xf] }
 0x22a   : > { %5343 = vmatprep.subr.msk.bf16.mxu1 %vm2007_vm10, %v4642_v45  ;;  %v4650_v46 = vcombine.low %v5399_v58, %v6246_v35  ;;  %v6761_v58 = vld [vmem:[#allocation22_spill] sm:$0xff] }
 0x22b   : > { %v4637_v57 = vcombine.low %v2871_v13, %v2871_v13  ;;  %v3019_v0 = vrot.slane %v3017_v42, 4  ;;  %v4647_v13 = vld [vmem:[%s6666_s7 + $0x10] sm:$0xf] }
 0x22d   : > { %v3023_v4 = vshrl.u32 %v4637_v57, 16  ;;  %v3026_v17 = vshll.u32 %v4637_v57, 16  ;;  %v3020_v32 = vor.u32 %v3019_v0, %v3016_v18  ;;  %v3380_v57 = vsel %vm2007_vm10, %v4656_v34, 0  ;;  %v4671_v18 = vld [vmem:[%s6665_s6 + $0x18] sm:$0xf]  ;;  %v6754_v0 = vld [vmem:[#allocation23_spill] sm:$0xff] }
 0x22e   : > { %4980 = vmatmul.mubr.msk.bf16.gmra.mrb[12].mxu0 %vm1839_vm11, %v4603_v1  ;;  %v3012_v1 = vsel %vm798_vm5, %v3002_v30, %v3011_v61  ;;  %v3127_v30 = vpack.c.bf16 %v6338_v43, %v6291_v24  ;;  %v6478_v24 = vld [vmem:[#allocation2 + $0x48] sm:$0xff]  ;;  %v4648_v43 = vcombine.low %v6177_v39, %v6185_v12 }
 0x22f   : > { %4985 = vmatprep.mubr.msk.bf16.mxu0 %vm1839_vm11, %v2509_v59  ;;  %v3025_v7 = vrot.slane %v3023_v4, 3  ;;  %v3028_v23 = vrot.slane %v3026_v17, 4  ;;  %v3021_v21 = vsel %vm798_vm5, %v3011_v61, %v3020_v32  ;;  %v3128_v59 = vpack.c.bf16 %v6354_v48, %v6346_v63  ;;  %v6751_v39 = vld [vmem:[#allocation4_spill] sm:$0xff] }
 0x230   : > { %5010 = vmatmul.mubr.msk.bf16.gmra.mrb[0].mxu1 %vm1839_vm11, %v2862_v50  ;;  %v3256_v50 = vsel %vm2007_vm10, %v4647_v13, 0  ;;  %v3130_v63 = vpack.c.bf16 %v6478_v24, %v6381_v14  ;;  %v4649_v48 = vcombine.low %v6188_v15, %v5398_v47  ;;  %v3339_v12 = vpack.c.bf16 %v6751_v39, %v6421_v56  ;;  %v3616_v61 = vld [vmem:[%s5782_s21 + $0x8] sm:$0x8]  ;;  %v6533_v4 = vld [vmem:[%s5782_s21 + $0xc] sm:$0xf] }
 0x231   : > { %5015 = vmatprep.mubr.msk.bf16.mxu1 %vm1839_vm11, %v3003_v37  ;;  %v3029_v45 = vor.u32 %v3028_v23, %v3025_v7  ;;  %v4661_v37 = vld [vmem:[%s6666_s7 + $0x14] sm:$0xf]  ;;  %v4651_v15 = vcombine.low %v6249_v6, %v6429_v36  ;;  %v6752_v6 = vld [vmem:[#allocation20_spill] sm:$0xff]  ;;  %v3646_v56 = vsel %vm2007_vm10, %v4671_v18, 0  ;;  %v4676_v36 = vld [vmem:[%s6666_s7 + $0x18] sm:$0xf]  ;;  %v3623_v17 = vmul.bf16 %v6533_v4, %v5604_v19 }
 0x232   : > { %v3352_v35 = vmul.bf16 %v6749_v27, %v3339_v12  ;;  %v3529_v14 = vsel %vm2007_vm10, %v4661_v37, 0  ;;  %v6760_v47 = vmul.bf16 %v6742_v60, %v6287_v62 }
 0x233   : > { %v3030_v42 = vsel %vm798_vm5, %v3020_v32, %v3029_v45  ;;  %v6538_v32 = vld [vmem:[%s5782_s21 + $0x14] sm:$0xf]  ;;  %v6758_v45 = vld [vmem:[#allocation19_spill] sm:$0xff] }
 0x236   : > { %4986 = vmatmul.mubr.msk.bf16.vlgmr.msra.gmra.mrb[8].mxu0 %vm1839_vm11, %v2510_v25  ;;  %v3625_v25 = vmul.bf16 %v6538_v32, %v5611_v26  ;;  %v3803_v26 = vsel %vm2007_vm10, %v4676_v36, 0 }
 0x238   : > { %5016 = vmatmul.mubr.msk.bf16.vlgmr.msra.gmra.mrb[4].mxu1 %vm1839_vm11, %v3012_v1  ;;  %v3622_v1 = vmul.bf16 %v3616_v61, %v5585_v55 }
 0x239   : > { %5024 = vmatpush3.bf16.msra.mxu1 %v3146_v8  ;;  %5019 = vmatprep.mubr.msk.bf16.mxu1 %vm1839_vm11, %v3021_v21  ;;  %v6755_v8 = vld [vmem:[#allocation24_spill] sm:$0xff] }
 0x23a   : > { %5344 = vmatprep.subr.msk.bf16.mxu1 %vm2007_vm10, %v4647_v13  ;;  %v4677_v13 = vcombine.low %v3622_v1, %v3623_v17 }
 0x240   : > { %5020 = vmatmul.mubr.msk.bf16.gmra.mrb[0].mxu1 %vm1839_vm11, %v3030_v42  ;;  %v3629_v42 = vmul.bf16 %v6758_v45, %v5649_v3  ;;  %v4705_v45 = vld [vmem:[%s6666_s7 + $0x20] sm:$0xf] }
 0x241   : > { %5025 = vmatprep.mubr.msk.bf16.mxu1 %vm1839_vm11, %v3127_v30  ;;  %v3747_v30 = vshrl.u32 %v4677_v13, 16 }
 0x248   : > { %5026 = vmatmul.mubr.msk.bf16.vlgmr.msra.gmra.mrb[4].mxu1 %vm1839_vm11, %v3128_v59  ;;  %v3750_v59 = vshll.u32 %v4677_v13, 16  ;;  %v5404_v13 = vld [vmem:[%s5782_s21 + $0x18] sm:$0xf] }
 0x249   : > { %5034 = vmatpush3.bf16.msra.mxu1 %v3256_v50  ;;  %5029 = vmatprep.mubr.msk.bf16.mxu1 %vm1839_vm11, %v3129_v51  ;;  %v6553_v50 = vld [vmem:[%s5782_s21 + $0x20] sm:$0xf]  ;;  %v6759_v51 = vmul.bf16 %v6735_v29, %v6263_v41  ;;  %v3767_v29 = vshll.u32 %v6761_v58, 16 }
 0x24a   : > { %5345 = vmatprep.subr.msk.bf16.mxu1 %vm2007_vm10, %v4656_v34  ;;  %v3628_v55 = vmul.bf16 %v6553_v50, %v5659_v9  ;;  %v3749_v9 = vrot.slane %v3747_v30, 3 }
 0x250   : > { %5030 = vmatmul.mubr.msk.bf16.gmra.mrb[0].mxu1 %vm1839_vm11, %v3130_v63  ;;  %v6565_v63 = vld [vmem:[%s5782_s21 + $0x28] sm:$0xf] }
 0x251   : > { %5035 = vmatprep.mubr.msk.bf16.mxu1 %vm1839_vm11, %v4648_v43  ;;  %v4680_v43 = vcombine.low %v3628_v55, %v3629_v42  ;;  %v3630_v41 = vmul.bf16 %v6565_v63, %v6748_v11  ;;  %v6763_v42 = vmul.bf16 %v6271_v40, %v6289_v33  ;;  %v6767_v40 = vld [vmem:[#allocation28_spill] sm:$0xff] }
 0x253   : > { %v3776_v39 = vshll.u32 %v4680_v43, 16  ;;  %v4681_v60 = vcombine.low %v3630_v41, %v3630_v41 }
 0x258   : > { %5036 = vmatmul.mubr.msk.bf16.vlgmr.msra.gmra.mrb[4].mxu1 %vm1839_vm11, %v4649_v48  ;;  %v3752_v48 = vrot.slane %v3750_v59, 4 }
 0x259   : > { %5044 = vmatpush3.bf16.msra.mxu1 %v3380_v57  ;;  %5039 = vmatprep.mubr.msk.bf16.mxu1 %vm1839_vm11, %v4650_v46  ;;  %v3764_v46 = vshrl.u32 %v6761_v58, 16 }
 0x25a   : > { %5346 = vmatprep.subr.msk.bf16.mxu1 %vm2007_vm10, %v4661_v37  ;;  %v3773_v37 = vshrl.u32 %v4680_v43, 16  ;;  %v3753_v12 = vor.u32 %v3752_v48, %v3749_v9 }
 0x260   : > { %5040 = vmatmul.mubr.msk.bf16.gmra.mrb[0].mxu1 %vm1839_vm11, %v4651_v15  ;;  %v3766_v15 = vrot.slane %v3764_v46, 3 }
 0x261   : > { %5045 = vmatprep.mubr.msk.bf16.mxu1 %vm1839_vm11, %v3352_v35  ;;  %v3769_v35 = vrot.slane %v3767_v29, 4 }
 0x268   : > { %5046 = vmatmul.mubr.msk.bf16.vlgmr.msra.gmra.mrb[4].mxu1 %vm1839_vm11, %v6309_v49  ;;  %v6753_v49 = vld [vmem:[#allocation21_spill] sm:$0xff] }
 0x269   : > { %5054 = vmatpush3.bf16.msra.mxu1 %v3529_v14  ;;  %5049 = vmatprep.mubr.msk.bf16.mxu1 %vm1839_vm11, %v6326_v28  ;;  %v6527_v28 = vld [vmem:[%s5782_s21 + $0x10] sm:$0xf]  ;;  %v3775_v14 = vrot.slane %v3773_v37, 3 }
 0x26a   : > { %5347 = vmatprep.subr.msk.bf16.mxu1 %vm2007_vm10, %v4671_v18  ;;  %v3778_v18 = vrot.slane %v3776_v39, 4 }
 0x26c   : > { %v3779_v11 = vor.u32 %v3778_v18, %v3775_v14 }
 0x270   : > { %5050 = vmatmul.mubr.msk.bf16.gmra.mrb[0].mxu1 %vm1839_vm11, %v6328_v44  ;;  %v3624_v44 = vmul.bf16 %v6527_v28, %v5616_v31  ;;  %v6756_v31 = vld [vmem:[#allocation15_spill] sm:$0xff] }
 0x271   : > { %5055 = vmatprep.mubr.msk.bf16.mxu1 %vm1839_vm11, %v6752_v6  ;;  %v6757_v23 = vmul.bf16 %v6728_v54, %v6756_v31  ;;  %v4686_v54 = vld [vmem:[%s6665_s6 + $0x1c] sm:$0xf]  ;;  %v3770_v6 = vor.u32 %v3769_v35, %v3766_v15  ;;  %v3885_v31 = vld [vmem:[#allocation2 + $0x50] sm:$0xff] }
 0x272   : > { %v4678_v7 = vcombine.low %v3624_v44, %v3625_v25 }
 0x273   : > { %v3780_v17 = vsel %vm798_vm5, %v3770_v6, %v3779_v11 }
 0x274   : > { %v3755_v21 = vshrl.u32 %v4678_v7, 16  ;;  %v3758_v19 = vshll.u32 %v4678_v7, 16  ;;  %v4700_v7 = vld [vmem:[%s6665_s6 + $0x20] sm:$0xf] }
 0x276   : > { %v3757_v34 = vrot.slane %v3755_v21, 3  ;;  %v3760_v3 = vrot.slane %v3758_v19, 4  ;;  %v5405_v21 = vld [vmem:[%s5782_s21 + $0x1c] sm:$0xf] }
 0x277   : > { %v4694_v19 = vcombine.low %v5405_v21, %v6553_v50 }
 0x278   : > { %5056 = vmatmul.mubr.msk.bf16.vlgmr.msra.gmra.mrb[4].mxu1 %vm1839_vm11, %v6753_v49  ;;  %v3761_v57 = vor.u32 %v3760_v3, %v3757_v34  ;;  %v3905_v49 = vsel %vm2007_vm10, %v4686_v54, 0 }
 0x279   : > { %5064 = vmatpush3.bf16.msra.mxu1 %v3646_v56  ;;  %5059 = vmatprep.mubr.msk.bf16.mxu1 %vm1839_vm11, %v6754_v0  ;;  %v3782_v56 = vshrl.u32 %v4681_v60, 16 }
 0x27a   : > { %5348 = vmatprep.subr.msk.bf16.mxu1 %vm2007_vm10, %v4676_v36  ;;  %v3762_v62 = vsel %vm798_vm5, %v3753_v12, %v3761_v57  ;;  %v3785_v36 = vshll.u32 %v4681_v60, 16  ;;  %v3771_v0 = vsel %vm798_vm5, %v3761_v57, %v3770_v6 }
 0x27b   : > { %v3784_v44 = vrot.slane %v3782_v56, 3 }
 0x27c   : > { %v3787_v61 = vrot.slane %v3785_v36, 4 }
 0x27e   : > { %v3788_v25 = vor.u32 %v3787_v61, %v3784_v44 }
 0x280   : > { %5060 = vmatmul.mubr.msk.bf16.gmra.mrb[0].mxu1 %vm1839_vm11, %v6755_v8  ;;  %v3789_v8 = vsel %vm798_vm5, %v3779_v11, %v3788_v25 }
 0x281   : > { %5065 = vmatprep.mubr.msk.bf16.mxu1 %vm1839_vm11, %v6757_v23  ;;  %v3889_v23 = vpack.c.bf16 %v3885_v31, %v6478_v24  ;;  %v5406_v24 = vld [vmem:[%s5782_s21 + $0x24] sm:$0xf]  ;;  %s4717_s21 = sshll.u32 %s6769_s14, 6 }
 0x282   : > { %s439_s15 = scalar_lea.vmem %s6669_s10, %s4717_s21 }
 0x288   : > { %5066 = vmatmul.mubr.msk.bf16.vlgmr.msra.gmra.mrb[4].mxu1 %vm1839_vm11, %v6759_v51 }
 0x289   : > { %5074 = vmatpush3.bf16.msra.mxu1 %v3803_v26  ;;  %5069 = vmatprep.mubr.msk.bf16.mxu1 %vm1839_vm11, %v6760_v47  ;;  %v6766_v26 = vld [vmem:[#allocation27_spill] sm:$0xff] }
 0x28a   : > { %5349 = vmatprep.subr.msk.bf16.mxu1 %vm2007_vm10, %v4686_v54 }
 0x290   : > { %5070 = vmatmul.mubr.msk.bf16.gmra.mrb[0].mxu1 %vm1839_vm11, %v6334_v20  ;;  %v4691_v20 = vld [vmem:[%s6666_s7 + $0x1c] sm:$0xf] }
 0x291   : > { %5075 = vmatprep.mubr.msk.bf16.mxu1 %vm1839_vm11, %v3762_v62  ;;  %v4015_v1 = vsel %vm2007_vm10, %v4691_v20, 0 }
 0x298   : > { %5076 = vmatmul.mubr.msk.bf16.vlgmr.msra.gmra.mrb[4].mxu1 %vm1839_vm11, %v3771_v0 }
 0x299   : > { %5084 = vmatpush3.bf16.msra.mxu1 %v3905_v49  ;;  %5079 = vmatprep.mubr.msk.bf16.mxu1 %vm1839_vm11, %v3780_v17 }
 0x29a   : > { %5350 = vmatprep.subr.msk.bf16.mxu1 %vm2007_vm10, %v4691_v20 }
 0x2a0   : > { %5080 = vmatmul.mubr.msk.bf16.gmra.mrb[0].mxu1 %vm1839_vm11, %v3789_v8 }
 0x2a1   : > { %5085 = vmatprep.mubr.msk.bf16.mxu1 %vm1839_vm11, %v6352_v10  ;;  %v4692_v10 = vcombine.low %v6533_v4, %v6527_v28  ;;  %v4695_v28 = vcombine.low %v5406_v24, %v6565_v63  ;;  %v6762_v4 = vmul.bf16 %v6749_v27, %v6750_v2  ;;  %v6764_v27 = vld [vmem:[#allocation25_spill] sm:$0xff]  ;;  %v6765_v2 = vld [vmem:[#allocation26_spill] sm:$0xff] }
 0x2a8   : > { %5086 = vmatmul.mubr.msk.bf16.vlgmr.msra.gmra.mrb[4].mxu1 %vm1839_vm11, %v6358_v22  ;;  %v4693_v22 = vcombine.low %v6538_v32, %v5404_v13  ;;  %v4288_v32 = vsel %vm2007_vm10, %v4705_v45, 0 }
 0x2a9   : > { %5094 = vmatpush3.bf16.msra.mxu1 %v4015_v1  ;;  %5089 = vmatprep.mubr.msk.bf16.mxu1 %vm1839_vm11, %v6389_v52  ;;  %v4139_v52 = vsel %vm2007_vm10, %v4700_v7, 0 }
 0x2aa   : > { %5351 = vmatprep.subr.msk.bf16.mxu1 %vm2007_vm10, %v4700_v7 }
 0x2b0   : > { %5090 = vmatmul.mubr.msk.bf16.gmra.mrb[0].mxu1 %vm1839_vm11, %v3889_v23 }
 0x2b1   : > { %5095 = vmatprep.mubr.msk.bf16.mxu1 %vm1839_vm11, %v4692_v10 }
 0x2b8   : > { %5096 = vmatmul.mubr.msk.bf16.vlgmr.msra.gmra.mrb[4].mxu1 %vm1839_vm11, %v4693_v22 }
 0x2b9   : > { %5104 = vmatpush3.bf16.msra.mxu1 %v4139_v52  ;;  %5099 = vmatprep.mubr.msk.bf16.mxu1 %vm1839_vm11, %v4694_v19 }
 0x2ba   : > { %5352 = vmatprep.subr.msk.bf16.mxu1 %vm2007_vm10, %v4705_v45 }
 0x2c0   : > { %5100 = vmatmul.mubr.msk.bf16.gmra.mrb[0].mxu1 %vm1839_vm11, %v4695_v28 }
 0x2c1   : > { %5105 = vmatprep.mubr.msk.bf16.mxu1 %vm1839_vm11, %v6762_v4 }
 0x2c8   : > { %5106 = vmatmul.mubr.msk.bf16.vlgmr.msra.gmra.mrb[4].mxu1 %vm1839_vm11, %v6763_v42 }
 0x2c9   : > { %5114 = vmatpush3.bf16.msra.mxu1 %v4288_v32  ;;  %5109 = vmatprep.mubr.msk.bf16.mxu1 %vm1839_vm11, %v4113_v5 }
 0x2d0   : > { %5110 = vmatmul.mubr.msk.bf16.gmra.mrb[0].mxu1 %vm1839_vm11, %v6344_v38 }
 0x2d1   : > { %5115 = vmatprep.mubr.msk.bf16.mxu1 %vm1839_vm11, %v6764_v27 }
 0x2d8   : > { %5116 = vmatmul.mubr.msk.bf16.vlgmr.msra.gmra.mrb[4].mxu1 %vm1839_vm11, %v6765_v2 }
 0x2d9   : > { %5119 = vmatprep.mubr.msk.bf16.mxu1 %vm1839_vm11, %v6766_v26 }
 0x2e0   : > { %5120 = vmatmul.mubr.msk.bf16.gmra.mrb[0].mxu1 %vm1839_vm11, %v6767_v40 }
 0x301   : > { %v4981_v33 = vpop.f32.mrb[12].mxu0 }
 0x302   : > { %v2345_v30 = vpop.f32.mrb[13].mxu0 }
 0x303   : > { %v4982_v53 = vpop.f32.mrb[14].mxu0 }
 0x304   : > { %v2348_v16 = vpop.f32.mrb[15].mxu0 }
 0x309   : > { %v4987_v5 = vpop.f32.mrb[8].mxu0 }
 0x30a   : > { %v2656_v59 = vpop.f32.mrb[9].mxu0 }
 0x30b   : > { %v4988_v50 = vpop.f32.mrb[10].mxu0 }
 0x30c   : > { %v2659_v38 = vpop.f32.mrb[11].mxu0 }
 0x3ab   : > { %v5117_v55 = vpop.f32.mrb[4].mxu1 }
 0x3ac   : > { %v5125_v54 = vadd.f32 %v5117_v55, %v4987_v5  ;;  %v4324_v51 = vpop.f32.mrb[5].mxu1 }
 0x3ad   : > { %v5126_v34 = vadd.f32 %v4324_v51, %v2656_v59  ;;  %v5118_v3 = vpop.f32.mrb[6].mxu1 }
 0x3ae   : > { %v4365_v43 = vmax.f32 %v5125_v54, 0.0  ;;  %v5127_v63 = vadd.f32 %v5118_v3, %v4988_v50  ;;  %v4327_v47 = vpop.f32.mrb[7].mxu1 }
 0x3af   : > { %v4363_v9 = vmax.f32 %v5126_v34, 0.0  ;;  %v5128_v48 = vadd.f32 %v4327_v47, %v2659_v38 }
 0x3b0   : > { %4373 = vst.msk [vmem:[%s439_s15 + $0x10] sm:$0xff] %vm1839_vm11, %v4365_v43  ;;  %v4366_v58 = vmax.f32 %v5127_v63, 0.0 }
 0x3b1   : > { %4371 = vst.msk [vmem:[%s439_s15] sm:$0xff] %vm1839_vm11, %v4363_v9  ;;  %v4364_v46 = vmax.f32 %v5128_v48, 0.0 }
 0x3b2   : > { %4374 = vst.msk [vmem:[%s439_s15 + $0x18] sm:$0xff] %vm1839_vm11, %v4366_v58 }
 0x3b3   : > { %4372 = vst.msk [vmem:[%s439_s15 + $0x8] sm:$0xff] %vm1839_vm11, %v4364_v46  ;;  %v5121_v29 = vpop.f32.mrb[0].mxu1 }
 0x3b4   : > { %v5129_v41 = vadd.f32 %v5121_v29, %v4981_v33  ;;  %v4340_v57 = vpop.f32.mrb[1].mxu1 }
 0x3b5   : > { %v5130_v37 = vadd.f32 %v4340_v57, %v2345_v30  ;;  %v5122_v39 = vpop.f32.mrb[2].mxu1 }
 0x3b6   : > { %v4369_v12 = vmax.f32 %v5129_v41, 0.0  ;;  %v5131_v15 = vadd.f32 %v5122_v39, %v4982_v53  ;;  %v4343_v35 = vpop.f32.mrb[3].mxu1 }
 0x3b7   : > { %v4367_v60 = vmax.f32 %v5130_v37, 0.0  ;;  %v5132_v62 = vadd.f32 %v4343_v35, %v2348_v16 }
 0x3b8   : > { %4377 = vst.msk [vmem:[%s439_s15 + $0x30] sm:$0xff] %vm1839_vm11, %v4369_v12  ;;  %v4370_v14 = vmax.f32 %v5131_v15, 0.0 }
 0x3b9   : > { %4375 = vst.msk [vmem:[%s439_s15 + $0x20] sm:$0xff] %vm1839_vm11, %v4367_v60  ;;  %v4368_v18 = vmax.f32 %v5132_v62, 0.0 }
 0x3ba   : > { %4378 = vst.msk [vmem:[%s439_s15 + $0x38] sm:$0xff] %vm1839_vm11, %v4370_v14 }
 0x3bb   : > { %4376 = vst.msk [vmem:[%s439_s15 + $0x28] sm:$0xff] %vm1839_vm11, %v4368_v18 }
 0x3bc PF: > { %s20_s13 = sadd.s32 1, %s5413_s13  }
 0x3bd   : > { %p17_p4 = scmp.ge.s32.totalorder %s20_s13, 4  }
 0x3bf   :  { %19 = sbr.rel (!%p17_p4) target bundleno = 1 (0x1), region = 126 }

</bundles_post_ra>
